<compile_context>
chip_gen: v5e
topology: v5e:2x2
jax: 0.10.0
libtpu: 0.0.40
codegen_flags: <defaults>
</compile_context>

<pallas_src>
import functools

import jax
import jax.numpy as jnp
from jax import lax
from jax.experimental import pallas as pl
from jax.experimental.pallas import tpu as pltpu


# ---------------------------------------------------------------------------
# Slab layout constants (all row offsets are multiples of 8).
#   weight slab: (184, 128) f32
#     rows   0: 36  cols 0:41  W1x          (l_z_x layer 1)
#     rows  40: 75  cols 0:41  W1y_x        (l_y_xz layer 1, x columns)
#     rows  80:100  cols 0:36  W2x          (l_z_x layer 2)
#     rows 104:139  cols 0:20  W1y_h = W1y_mu @ W3x_mu   (folded mu head)
#     rows 144:164  cols 0:35  W2y          (l_y_xz layer 2)
#     rows 168:177  cols 0:20  W3y          (l_y_xz layer 3)
#   bias slab: (144, 1) f32
#     rows   0: 36  b1x
#     rows  40: 75  b1y' = b1y + W1y_mu @ b3x_mu
#     rows  80:100  b2x
#     rows 104:124  b2y
#     rows 128:137  b3y
# ---------------------------------------------------------------------------
_W_ROWS = 184
_B_ROWS = 144
_W_COLS = 128


def _softplus(v):
    # numerically stable softplus, matches torch.nn.Softplus (beta=1)
    return jnp.logaddexp(v, 0.0)


def cvae1_kernel(x_ref, w_ref, b_ref, out_ref):
    # x_ref: (TB, 41)   w_ref: (184, 128)   b_ref: (144, 1)   out_ref: (9, TB)
    x = x_ref[...]                                        # (TB, 41)

    # ---- stacked first layer:  [W1x ; W1y_x] @ x^T  (contraction on dim 41) ----
    w_stack = w_ref[0:80, 0:41]                           # (80, 41)
    h_all = lax.dot_general(
        w_stack, x, (((1,), (1,)), ((), ())),
        preferred_element_type=jnp.float32,
    ) + b_ref[0:80, :]                                    # (80, TB)

    a = h_all[0:36, :]      # pre-activation of l_z_x layer 1
    u = h_all[40:75, :]     # W1y_x @ x + b1y'  (partial pre-act of l_y_xz layer 1)

    # ---- l_z_x branch (mu head folded away) ----
    h = _softplus(_softplus(a))                           # double Softplus, (36, TB)
    h = _softplus(
        jnp.dot(w_ref[80:100, 0:36], h, preferred_element_type=jnp.float32)
        + b_ref[80:100, :]
    )                                                     # (20, TB)

    # ---- l_y_xz branch (cat([x, mu]) expressed via the folded W1y_h) ----
    h = _softplus(
        u + jnp.dot(w_ref[104:139, 0:20], h, preferred_element_type=jnp.float32)
    )                                                     # (35, TB)
    h = _softplus(
        jnp.dot(w_ref[144:164, 0:35], h, preferred_element_type=jnp.float32)
        + b_ref[104:124, :]
    )                                                     # (20, TB)
    y = jax.nn.sigmoid(
        jnp.dot(w_ref[168:177, 0:20], h, preferred_element_type=jnp.float32)
        + b_ref[128:137, :]
    )                                                     # (9, TB)

    out_ref[...] = y.astype(out_ref.dtype)


def _round_up(n, m):
    return ((n + m - 1) // m) * m


def _cdiv(a, b):
    return -(-a // b)


def _pick_tiling(B, tb_max):
    """Static (Python int) tile selection: lane tile tb (multiple of 128),
    block count n (>=2 and even when there is enough work, for v7x's 2 TCs),
    and padded batch b_pad = n * tb."""
    b128 = _round_up(max(B, 1), 128)
    n = _cdiv(b128, tb_max)
    if b128 > 128:
        n = max(n, 2)
        if n % 2:
            n += 1
    tb = _round_up(_cdiv(b128, n), 128)
    n = _cdiv(b128, tb)
    return tb, n, n * tb


@functools.partial(jax.jit, static_argnames=("tb_max",))
def cvae1_forward(x, w_slab, b_slab, *, tb_max=2048):
    """x: (B, 41) f32, w_slab: (184,128) f32, b_slab: (144,1) f32 -> (B, 9) f32."""
    B = x.shape[0]
    tb, n_blocks, b_pad = _pick_tiling(B, tb_max)

    x_pad = x if b_pad == B else jnp.pad(x, ((0, b_pad - B), (0, 0)))

    macs = 80 * 41 + 20 * 36 + 35 * 20 + 20 * 35 + 9 * 20   # per-sample MACs
    cost = pl.CostEstimate(
        flops=2 * macs * b_pad,
        transcendentals=303 * b_pad,                          # 5 softplus + sigmoid
        bytes_accessed=4 * (41 + 9) * b_pad + 4 * (_W_ROWS * _W_COLS + _B_ROWS),
    )

    yT = pl.pallas_call(
        cvae1_kernel,
        out_shape=jax.ShapeDtypeStruct((9, b_pad), jnp.float32),
        grid=(n_blocks,),
        in_specs=[
            pl.BlockSpec((tb, 41), lambda i: (i, 0)),              # batch-tiled x
            pl.BlockSpec((_W_ROWS, _W_COLS), lambda i: (0, 0)),    # grid-invariant weights
            pl.BlockSpec((_B_ROWS, 1), lambda i: (0, 0)),          # grid-invariant biases
        ],
        out_specs=pl.BlockSpec((9, tb), lambda i: (0, i)),         # lane-dense output
        compiler_params=pltpu.CompilerParams(
            dimension_semantics=("parallel",),
        ),
        cost_estimate=cost,
    )(x_pad, w_slab, b_slab)

    return yT[:, :B].T                                             # (B, 9)


# ---------------------------------------------------------------------------
# Parameter construction (host side).
# ---------------------------------------------------------------------------
def init_params(key):
    """Raw per-layer params in PyTorch Linear orientation: W (out,in), b (out,)."""
    def lin(k, fan_in, fan_out):
        kw, kb = jax.random.split(k)
        bound = 1.0 / jnp.sqrt(jnp.float32(fan_in))
        w = jax.random.uniform(kw, (fan_out, fan_in), jnp.float32, -bound, bound)
        b = jax.random.uniform(kb, (fan_out,), jnp.float32, -bound, bound)
        return w, b

    ks = jax.random.split(key, 6)
    w1x, b1x = lin(ks[0], 41, 36)    # l_z_x:  Linear(41,36)
    w2x, b2x = lin(ks[1], 36, 20)    #         Linear(36,20)
    w3x, b3x = lin(ks[2], 20, 6)     #         Linear(20,6)  (mu | logvar)
    w1y, b1y = lin(ks[3], 44, 35)    # l_y_xz: Linear(44,35)
    w2y, b2y = lin(ks[4], 35, 20)    #         Linear(35,20)
    w3y, b3y = lin(ks[5], 20, 9)     #         Linear(20,9)
    return (w1x, b1x, w2x, b2x, w3x, b3x, w1y, b1y, w2y, b2y, w3y, b3y)


def pack_params(raw):
    """Fold the mu head into the y-branch and pack everything into two
    pre-padded VMEM slabs (weights: (184,128); biases: (144,1))."""
    (w1x, b1x, w2x, b2x, w3x, b3x, w1y, b1y, w2y, b2y, w3y, b3y) = raw

    w3x_mu, b3x_mu = w3x[:3, :], b3x[:3]         # mu head (logvar half unused in forward)
    w1y_x, w1y_mu = w1y[:, :41], w1y[:, 41:]     # split cat([x, mu]) columns

    w1y_h = w1y_mu @ w3x_mu                      # (35, 20)  folded mu path
    b1y_f = b1y + w1y_mu @ b3x_mu                # (35,)

    W = jnp.zeros((_W_ROWS, _W_COLS), jnp.float32)
    W = W.at[0:36, 0:41].set(w1x)
    W = W.at[40:75, 0:41].set(w1y_x)
    W = W.at[80:100, 0:36].set(w2x)
    W = W.at[104:139, 0:20].set(w1y_h)
    W = W.at[144:164, 0:35].set(w2y)
    W = W.at[168:177, 0:20].set(w3y)

    Bv = jnp.zeros((_B_ROWS, 1), jnp.float32)
    Bv = Bv.at[0:36, 0].set(b1x)
    Bv = Bv.at[40:75, 0].set(b1y_f)
    Bv = Bv.at[80:100, 0].set(b2x)
    Bv = Bv.at[104:124, 0].set(b2y)
    Bv = Bv.at[128:137, 0].set(b3y)
    return W, Bv


def reference_forward(x, raw):
    """Pure-JAX mirror of the PyTorch CVAE1.forward using the raw params."""
    (w1x, b1x, w2x, b2x, w3x, b3x, w1y, b1y, w2y, b2y, w3y, b3y) = raw
    sp = jax.nn.softplus
    h = sp(sp(x @ w1x.T + b1x))
    h = sp(h @ w2x.T + b2x)
    h6 = h @ w3x.T + b3x
    mu = h6[:, :3]                               # chunk(2, dim=-1)[0]
    xz = jnp.concatenate([x, mu], axis=1)
    h = sp(xz @ w1y.T + b1y)
    h = sp(h @ w2y.T + b2y)
    return jax.nn.sigmoid(h @ w3y.T + b3y)


if __name__ == "__main__":
    key = jax.random.PRNGKey(0)
    kx, kp = jax.random.split(key)

    B = 300                                      # small; still exercises 2 grid blocks + padding
    x = jax.random.normal(kx, (B, 41), jnp.float32)

    raw = init_params(kp)
    w_slab, b_slab = pack_params(raw)

    out = cvae1_forward(x, w_slab, b_slab)
    out = jax.block_until_ready(out)

    ref = reference_forward(x, raw)
    assert out.shape == (B, 9)
    max_err = float(jnp.max(jnp.abs(out - ref)))
    assert jnp.allclose(out, ref, atol=1e-5, rtol=1e-5), f"mismatch vs reference: {max_err}"
    print("KERNEL_OK")
</pallas_src>

<mosaic_0001>
module attributes {stable_mosaic.version = 11 : i64} {
  func.func @cvae1_kernel(%arg0: i32, %arg1: memref<256x41xf32, #tpu.memory_space<vmem>>, %arg2: memref<184x128xf32, #tpu.memory_space<vmem>>, %arg3: memref<144x1xf32, #tpu.memory_space<vmem>>, %arg4: memref<9x256xf32, #tpu.memory_space<vmem>>) attributes {dimension_semantics = [#tpu.dimension_semantics<parallel>], iteration_bounds = array<i64: 2>, scalar_prefetch = 0 : i64, scratch_operands = 0 : i64, tpu.core_type = #tpu.core_type<tc>, window_params = [{transform_indices = @transform_0, window_bounds = array<i64: 256, 41>}, {pipeline_mode = #tpu.pipeline_mode<synchronous>, transform_indices = @transform_1, window_bounds = array<i64: 184, 128>}, {pipeline_mode = #tpu.pipeline_mode<synchronous>, transform_indices = @transform_2, window_bounds = array<i64: 144, 1>}, {transform_indices = @transform_3, window_bounds = array<i64: 9, 256>}]} {
    %c0 = arith.constant 0 : index
    %c0_0 = arith.constant 0 : index
    %0 = vector.load %arg1[%c0, %c0_0] : memref<256x41xf32, #tpu.memory_space<vmem>>, vector<256x41xf32>
    %c0_1 = arith.constant 0 : index
    %c0_2 = arith.constant 0 : index
    %1 = vector.load %arg2[%c0_1, %c0_2] : memref<184x128xf32, #tpu.memory_space<vmem>>, vector<80x41xf32>
    %cst = arith.constant dense<0.000000e+00> : vector<80x256xf32>
    %2 = tpu.matmul %1, %0, %cst {dimension_numbers = #tpu.dot_dimension_numbers<[1], [1], [0], [0], [0, 0, 1, 0], [], []>} : vector<80x41xf32>, vector<256x41xf32>, vector<80x256xf32> -> vector<80x256xf32>
    %c0_3 = arith.constant 0 : index
    %c0_4 = arith.constant 0 : index
    %3 = vector.load %arg3[%c0_3, %c0_4] : memref<144x1xf32, #tpu.memory_space<vmem>>, vector<80x1xf32>
    %4 = vector.broadcast %3 : vector<80x1xf32> to vector<80x256xf32>
    %5 = arith.addf %2, %4 : vector<80x256xf32>
    %6 = vector.extract_strided_slice %5 {offsets = [0, 0], sizes = [36, 256], strides = [1, 1]} : vector<80x256xf32> to vector<36x256xf32>
    %7 = vector.extract_strided_slice %5 {offsets = [40, 0], sizes = [35, 256], strides = [1, 1]} : vector<80x256xf32> to vector<35x256xf32>
    %cst_5 = arith.constant 0.000000e+00 : f32
    %8 = vector.broadcast %cst_5 : f32 to vector<36x256xf32>
    %9 = arith.maximumf %6, %8 : vector<36x256xf32>
    %10 = vector.broadcast %cst_5 : f32 to vector<36x256xf32>
    %11 = arith.subf %6, %10 : vector<36x256xf32>
    %12 = arith.cmpf one, %11, %11 : vector<36x256xf32>
    %13 = vector.broadcast %cst_5 : f32 to vector<36x256xf32>
    %14 = arith.addf %6, %13 : vector<36x256xf32>
    %15 = math.absf %11 : vector<36x256xf32>
    %cst_6 = arith.constant 0.000000e+00 : f32
    %16 = vector.broadcast %cst_6 : f32 to vector<36x256xf32>
    %17 = arith.subf %16, %15 : vector<36x256xf32>
    %18 = math.exp %17 : vector<36x256xf32>
    %19 = math.log1p %18 : vector<36x256xf32>
    %20 = arith.addf %9, %19 : vector<36x256xf32>
    %21 = arith.select %12, %14, %20 : vector<36x256xi1>, vector<36x256xf32>
    %cst_7 = arith.constant 0.000000e+00 : f32
    %22 = vector.broadcast %cst_7 : f32 to vector<36x256xf32>
    %23 = arith.maximumf %21, %22 : vector<36x256xf32>
    %24 = vector.broadcast %cst_7 : f32 to vector<36x256xf32>
    %25 = arith.subf %21, %24 : vector<36x256xf32>
    %26 = arith.cmpf one, %25, %25 : vector<36x256xf32>
    %27 = vector.broadcast %cst_7 : f32 to vector<36x256xf32>
    %28 = arith.addf %21, %27 : vector<36x256xf32>
    %29 = math.absf %25 : vector<36x256xf32>
    %cst_8 = arith.constant 0.000000e+00 : f32
    %30 = vector.broadcast %cst_8 : f32 to vector<36x256xf32>
    %31 = arith.subf %30, %29 : vector<36x256xf32>
    %32 = math.exp %31 : vector<36x256xf32>
    %33 = math.log1p %32 : vector<36x256xf32>
    %34 = arith.addf %23, %33 : vector<36x256xf32>
    %35 = arith.select %26, %28, %34 : vector<36x256xi1>, vector<36x256xf32>
    %c80 = arith.constant 80 : index
    %c0_9 = arith.constant 0 : index
    %36 = vector.load %arg2[%c80, %c0_9] : memref<184x128xf32, #tpu.memory_space<vmem>>, vector<20x36xf32>
    %cst_10 = arith.constant dense<0.000000e+00> : vector<20x256xf32>
    %37 = tpu.matmul %36, %35, %cst_10 {dimension_numbers = #tpu.dot_dimension_numbers<[1], [0], [0], [1], [0, 0, 1, 1], [], []>} : vector<20x36xf32>, vector<36x256xf32>, vector<20x256xf32> -> vector<20x256xf32>
    %c80_11 = arith.constant 80 : index
    %c0_12 = arith.constant 0 : index
    %38 = vector.load %arg3[%c80_11, %c0_12] : memref<144x1xf32, #tpu.memory_space<vmem>>, vector<20x1xf32>
    %39 = vector.broadcast %38 : vector<20x1xf32> to vector<20x256xf32>
    %40 = arith.addf %37, %39 : vector<20x256xf32>
    %cst_13 = arith.constant 0.000000e+00 : f32
    %41 = vector.broadcast %cst_13 : f32 to vector<20x256xf32>
    %42 = arith.maximumf %40, %41 : vector<20x256xf32>
    %43 = vector.broadcast %cst_13 : f32 to vector<20x256xf32>
    %44 = arith.subf %40, %43 : vector<20x256xf32>
    %45 = arith.cmpf one, %44, %44 : vector<20x256xf32>
    %46 = vector.broadcast %cst_13 : f32 to vector<20x256xf32>
    %47 = arith.addf %40, %46 : vector<20x256xf32>
    %48 = math.absf %44 : vector<20x256xf32>
    %cst_14 = arith.constant 0.000000e+00 : f32
    %49 = vector.broadcast %cst_14 : f32 to vector<20x256xf32>
    %50 = arith.subf %49, %48 : vector<20x256xf32>
    %51 = math.exp %50 : vector<20x256xf32>
    %52 = math.log1p %51 : vector<20x256xf32>
    %53 = arith.addf %42, %52 : vector<20x256xf32>
    %54 = arith.select %45, %47, %53 : vector<20x256xi1>, vector<20x256xf32>
    %c104 = arith.constant 104 : index
    %c0_15 = arith.constant 0 : index
    %55 = vector.load %arg2[%c104, %c0_15] : memref<184x128xf32, #tpu.memory_space<vmem>>, vector<35x20xf32>
    %cst_16 = arith.constant dense<0.000000e+00> : vector<35x256xf32>
    %56 = tpu.matmul %55, %54, %cst_16 {dimension_numbers = #tpu.dot_dimension_numbers<[1], [0], [0], [1], [0, 0, 1, 1], [], []>} : vector<35x20xf32>, vector<20x256xf32>, vector<35x256xf32> -> vector<35x256xf32>
    %57 = arith.addf %7, %56 : vector<35x256xf32>
    %cst_17 = arith.constant 0.000000e+00 : f32
    %58 = vector.broadcast %cst_17 : f32 to vector<35x256xf32>
    %59 = arith.maximumf %57, %58 : vector<35x256xf32>
    %60 = vector.broadcast %cst_17 : f32 to vector<35x256xf32>
    %61 = arith.subf %57, %60 : vector<35x256xf32>
    %62 = arith.cmpf one, %61, %61 : vector<35x256xf32>
    %63 = vector.broadcast %cst_17 : f32 to vector<35x256xf32>
    %64 = arith.addf %57, %63 : vector<35x256xf32>
    %65 = math.absf %61 : vector<35x256xf32>
    %cst_18 = arith.constant 0.000000e+00 : f32
    %66 = vector.broadcast %cst_18 : f32 to vector<35x256xf32>
    %67 = arith.subf %66, %65 : vector<35x256xf32>
    %68 = math.exp %67 : vector<35x256xf32>
    %69 = math.log1p %68 : vector<35x256xf32>
    %70 = arith.addf %59, %69 : vector<35x256xf32>
    %71 = arith.select %62, %64, %70 : vector<35x256xi1>, vector<35x256xf32>
    %c144 = arith.constant 144 : index
    %c0_19 = arith.constant 0 : index
    %72 = vector.load %arg2[%c144, %c0_19] : memref<184x128xf32, #tpu.memory_space<vmem>>, vector<20x35xf32>
    %cst_20 = arith.constant dense<0.000000e+00> : vector<20x256xf32>
    %73 = tpu.matmul %72, %71, %cst_20 {dimension_numbers = #tpu.dot_dimension_numbers<[1], [0], [0], [1], [0, 0, 1, 1], [], []>} : vector<20x35xf32>, vector<35x256xf32>, vector<20x256xf32> -> vector<20x256xf32>
    %c104_21 = arith.constant 104 : index
    %c0_22 = arith.constant 0 : index
    %74 = vector.load %arg3[%c104_21, %c0_22] : memref<144x1xf32, #tpu.memory_space<vmem>>, vector<20x1xf32>
    %75 = vector.broadcast %74 : vector<20x1xf32> to vector<20x256xf32>
    %76 = arith.addf %73, %75 : vector<20x256xf32>
    %cst_23 = arith.constant 0.000000e+00 : f32
    %77 = vector.broadcast %cst_23 : f32 to vector<20x256xf32>
    %78 = arith.maximumf %76, %77 : vector<20x256xf32>
    %79 = vector.broadcast %cst_23 : f32 to vector<20x256xf32>
    %80 = arith.subf %76, %79 : vector<20x256xf32>
    %81 = arith.cmpf one, %80, %80 : vector<20x256xf32>
    %82 = vector.broadcast %cst_23 : f32 to vector<20x256xf32>
    %83 = arith.addf %76, %82 : vector<20x256xf32>
    %84 = math.absf %80 : vector<20x256xf32>
    %cst_24 = arith.constant 0.000000e+00 : f32
    %85 = vector.broadcast %cst_24 : f32 to vector<20x256xf32>
    %86 = arith.subf %85, %84 : vector<20x256xf32>
    %87 = math.exp %86 : vector<20x256xf32>
    %88 = math.log1p %87 : vector<20x256xf32>
    %89 = arith.addf %78, %88 : vector<20x256xf32>
    %90 = arith.select %81, %83, %89 : vector<20x256xi1>, vector<20x256xf32>
    %c168 = arith.constant 168 : index
    %c0_25 = arith.constant 0 : index
    %91 = vector.load %arg2[%c168, %c0_25] : memref<184x128xf32, #tpu.memory_space<vmem>>, vector<9x20xf32>
    %cst_26 = arith.constant dense<0.000000e+00> : vector<9x256xf32>
    %92 = tpu.matmul %91, %90, %cst_26 {dimension_numbers = #tpu.dot_dimension_numbers<[1], [0], [0], [1], [0, 0, 1, 1], [], []>} : vector<9x20xf32>, vector<20x256xf32>, vector<9x256xf32> -> vector<9x256xf32>
    %c128 = arith.constant 128 : index
    %c0_27 = arith.constant 0 : index
    %93 = vector.load %arg3[%c128, %c0_27] : memref<144x1xf32, #tpu.memory_space<vmem>>, vector<9x1xf32>
    %94 = vector.broadcast %93 : vector<9x1xf32> to vector<9x256xf32>
    %95 = arith.addf %92, %94 : vector<9x256xf32>
    %96 = arith.negf %95 : vector<9x256xf32>
    %97 = math.exp %96 : vector<9x256xf32>
    %cst_28 = arith.constant 1.000000e+00 : f32
    %98 = vector.broadcast %cst_28 : f32 to vector<9x256xf32>
    %99 = arith.addf %98, %97 : vector<9x256xf32>
    %100 = arith.divf %98, %99 : vector<9x256xf32>
    %c0_29 = arith.constant 0 : index
    %c0_30 = arith.constant 0 : index
    %101 = vector.load %arg4[%c0_29, %c0_30] : memref<9x256xf32, #tpu.memory_space<vmem>>, vector<9x256xf32>
    tpu.vector_store %arg4[%c0_29, %c0_30], %100 {strides = array<i32>} : memref<9x256xf32, #tpu.memory_space<vmem>>, vector<9x256xf32>,
    return
  }
  func.func @transform_0(%arg0: i32) -> (i32, i32) {
    %c0_i32 = arith.constant 0 : i32
    %c0_i32_0 = arith.constant 0 : i32
    return %arg0, %c0_i32 : i32, i32
  }
  func.func @transform_1(%arg0: i32) -> (i32, i32) {
    %c0_i32 = arith.constant 0 : i32
    %c0_i32_0 = arith.constant 0 : i32
    %c0_i32_1 = arith.constant 0 : i32
    return %c0_i32, %c0_i32_0 : i32, i32
  }
  func.func @transform_2(%arg0: i32) -> (i32, i32) {
    %c0_i32 = arith.constant 0 : i32
    %c0_i32_0 = arith.constant 0 : i32
    %c0_i32_1 = arith.constant 0 : i32
    return %c0_i32, %c0_i32_0 : i32, i32
  }
  func.func @transform_3(%arg0: i32) -> (i32, i32) {
    %c0_i32 = arith.constant 0 : i32
    %c0_i32_0 = arith.constant 0 : i32
    return %c0_i32, %arg0 : i32, i32
  }
}

</mosaic_0001>

<bundles_post_ra>
// kernel: cvae1_forward.1
= control target key start
LH: loop header
LB: loop body
LE: loop exit
PB: predicated region body
PF: predicated region fallthrough
CT: control target
= control target key end

     0   :  { %s2124_s12 = smov 0   ;;  %s2126_s13 = smov 0   ;;  %s3076_s0 = inlined_call_operand.vmem [shape: f32[512,41], index: 0, kind: input, shape index: {}]   ;;  %s3077_s1 = inlined_call_operand.vmem [shape: f32[184,128], index: 1, kind: input, shape index: {}]   ;;  %s3078_s2 = inlined_call_operand.vmem [shape: f32[144,1], index: 2, kind: input, shape index: {}]   ;;  %s3079_s3 = inlined_call_operand.vmem [shape: f32[9,512], index: 3, kind: output, shape index: {}]  }
   0x1   :  { %s2128_s14 = smov 0  }
   0x2 LB: > { %s2137_s15 = sadd.s32 4294967295, %s2101_s14   ;;  %s2139_s16 = sadd.s32 1, %s2101_s14   ;;  %s2101_s14 = sphi %s2128_s14, %s3123_s14   ;;  %s2097_s13 = sphi %s2126_s13, %s3122_s13   ;;  %s2093_s12 = sphi %s2124_s12, %s3121_s12  }
   0x3   : > { %s85_s17 = ssub.s32 %s2101_s14, %s2139_s16  ;;  %s88_s18 = sadd.s32 1, %s2097_s13 }
   0x4   : > { %p86_p0 = scmp.eq.s32.totalorder %s85_s17, 0  ;;  %p98_p1 = scmp.ne.s32.totalorder %s2097_s13, %s2093_s12 }
   0x5   : > { %p99_p2 = scmp.eq.s32.totalorder %s2137_s15, 1  ;;  %p1767_p3 = scmp.ge.s32.totalorder %s2101_s14, 1 }
   0x6   : > { %s2147_s19 = scalar_select %p86_p0, %s2097_s13, %s88_s18  }
   0x7   : > { %p2149_p4 = por %p99_p2, %p98_p1  ;;  %p138_p5 = scmp.lt.s32.totalorder %s2101_s14, 3 }
   0x9   : > { %p139_p6 = pnand %p1767_p3, %p138_p5 }
   0xa   : > { %s1769_s21 = sshll.u32 (!%p139_p6), %s2137_s15, 5  ;;  %s158_s24 = sand.u32 (!%p139_p6), 1, %s2093_s12  }
   0xb   : > { %142 = sbr.rel (%p139_p6) target bundleno = 1083 (0x43b), region = 32  ;;  %p162_p7 = scmp.lt.s32.totalorder (!%p139_p6), %s1769_s21, 63 }
   0xc   : > { %s1768_s26 = sshll.u32 (!%p139_p6), %s158_s24, 5 }
   0xd   : > { %s3050_s12 = scalar_lea.vmem (!%p139_p6), [#allocation2], %s1768_s26 }
  0x10   : > { %s3125_s21 = smov (!%p162_p7, %s1769_s21), 63  ;;  %vm270_vm0 = vcmask 334848   ;;  %v214_v14 = vld [vmem:[%s3078_s2 + $0x20] sm:$0xff]  ;;  %v2103_v17 = vmov 0   ;;  %v212_v20 = vld [vmem:[%s3078_s2 + $0x10] sm:$0xff]  ;;  %v213_v21 = vld [vmem:[%s3078_s2 + $0x18] sm:$0xff] }
  0x11   : > { %s1770_s22 = sshll.u32 %s3125_s21, 3  ;;  %1892 = vset.pattern.permute.xlu0 %v2103_v17  ;;  %1893 = vset.pattern.permute.xlu1 %v2103_v17  ;;  %v211_v26 = vld [vmem:[%s3078_s2 + $0x8] sm:$0xff]  ;;  %v855_v27 = vld [vmem:[%s3078_s2 + $0x58] sm:$0xff]  ;;  %v854_v32 = vld [vmem:[%s3078_s2 + $0x50] sm:$0xff]  ;;  %s1866_s27 = sshll.u32 (%p2149_p4), %s2137_s15, 4 }
  0x12   : > { %s2157_s25 = scalar_lea.vmem %s3076_s0, %s1770_s22  ;;  %242 = vperm.xlu0 %1892, %v214_v14   ;;  %1894 = vset.pattern.permute.xlu2 %v2103_v17  ;;  %v218_v33 = vld [vmem:[%s3078_s2 + $0x40] sm:$0xff]  ;;  %v217_v38 = vld [vmem:[%s3078_s2 + $0x38] sm:$0xff]  ;;  %v215_v39 = vld [vmem:[%s3078_s2 + $0x28] sm:$0xff]  ;;  %s1689_s29 = scalar_lea.vmem (%p2149_p4), %s3079_s3, %s1866_s27 }
  0x13   : > { %v183_v0 = vld [vmem:[%s2157_s25 + $0x78] sm:$0xff]  ;;  %v182_v2 = vld [vmem:[%s2157_s25 + $0x70] sm:$0xff]  ;;  %v181_v4 = vld [vmem:[%s2157_s25 + $0x68] sm:$0xff]  ;;  %232 = vperm.xlu1 %1893, %v212_v20  }
  0x14   : > { %v199_v1 = vld [vmem:[%s2157_s25 + $0xf8] sm:$0xff]  ;;  %1771 = vmatpush.xpose.msk.msra.mxu0 %vm270_vm0, %v183_v0  ;;  %v198_v3 = vld [vmem:[%s2157_s25 + $0xf0] sm:$0xff]  ;;  %v197_v5 = vld [vmem:[%s2157_s25 + $0xe8] sm:$0xff] }
  0x15   : > { %1797 = vmatpush.xpose.msk.msra.mxu1 %vm270_vm0, %v199_v1  ;;  %v180_v6 = vld [vmem:[%s2157_s25 + $0x60] sm:$0xff]  ;;  %v179_v8 = vld [vmem:[%s2157_s25 + $0x58] sm:$0xff]  ;;  %v178_v10 = vld [vmem:[%s2157_s25 + $0x50] sm:$0xff] }
  0x16   : > { %v196_v7 = vld [vmem:[%s2157_s25 + $0xe0] sm:$0xff]  ;;  %v195_v9 = vld [vmem:[%s2157_s25 + $0xd8] sm:$0xff]  ;;  %v194_v11 = vld [vmem:[%s2157_s25 + $0xd0] sm:$0xff] }
  0x17   : > { %v177_v12 = vld [vmem:[%s2157_s25 + $0x48] sm:$0xff]  ;;  %v176_v15 = vld [vmem:[%s2157_s25 + $0x40] sm:$0xff]  ;;  %v175_v18 = vld [vmem:[%s2157_s25 + $0x38] sm:$0xff] }
  0x18   : > { %1772 = vmatpush.xpose.msk.msra.mxu0 %vm270_vm0, %v182_v2  ;;  %v193_v13 = vld [vmem:[%s2157_s25 + $0xc8] sm:$0xff]  ;;  %v192_v16 = vld [vmem:[%s2157_s25 + $0xc0] sm:$0xff]  ;;  %v191_v19 = vld [vmem:[%s2157_s25 + $0xb8] sm:$0xff] }
  0x19   : > { %1798 = vmatpush.xpose.msk.msra.mxu1 %vm270_vm0, %v198_v3  ;;  %v174_v22 = vld [vmem:[%s2157_s25 + $0x30] sm:$0xff]  ;;  %v173_v24 = vld [vmem:[%s2157_s25 + $0x28] sm:$0xff]  ;;  %v172_v28 = vld [vmem:[%s2157_s25 + $0x20] sm:$0xff] }
  0x1a   : > { %v190_v23 = vld [vmem:[%s2157_s25 + $0xb0] sm:$0xff]  ;;  %237 = vperm.xlu0 %1892, %v213_v21   ;;  %v189_v25 = vld [vmem:[%s2157_s25 + $0xa8] sm:$0xff]  ;;  %v188_v29 = vld [vmem:[%s2157_s25 + $0xa0] sm:$0xff] }
  0x1b   : > { %227 = vperm.xlu1 %1893, %v211_v26   ;;  %v171_v30 = vld [vmem:[%s2157_s25 + $0x18] sm:$0xff]  ;;  %v170_v34 = vld [vmem:[%s2157_s25 + $0x10] sm:$0xff]  ;;  %v169_v36 = vld [vmem:[%s2157_s25 + $0x8] sm:$0xff] }
  0x1c   : > { %1773 = vmatpush.xpose.msk.msra.mxu0 %vm270_vm0, %v181_v4  ;;  %v187_v31 = vld [vmem:[%s2157_s25 + $0x98] sm:$0xff]  ;;  %v186_v35 = vld [vmem:[%s2157_s25 + $0x90] sm:$0xff]  ;;  %v185_v37 = vld [vmem:[%s2157_s25 + $0x88] sm:$0xff] }
  0x1d   : > { %1799 = vmatpush.xpose.msk.msra.mxu1 %vm270_vm0, %v197_v5  ;;  %v168_v40 = vld [vmem:[%s2157_s25] sm:$0xff]  ;;  %v1335_v43 = vld [vmem:[%s3078_s2 + $0x78] sm:$0xf]  ;;  %v1333_v45 = vld [vmem:[%s3078_s2 + $0x68] sm:$0xff] }
  0x1e   : > { %v184_v41 = vld [vmem:[%s2157_s25 + $0x80] sm:$0xff]  ;;  %v201_v46 = vld [vmem:[%s3077_s1 + $0x8] sm:$0xff]  ;;  %v202_v49 = vld [vmem:[%s3077_s1 + $0x10] sm:$0xff] }
  0x1f   : > { %v200_v42 = vld [vmem:[%s3077_s1] sm:$0xff]  ;;  %v219_v50 = vld [vmem:[%s3078_s2 + $0x48] sm:$0xff]  ;;  %v203_v51 = vld [vmem:[%s3077_s1 + $0x18] sm:$0xff] }
  0x20   : > { %1774 = vmatpush.xpose.msk.msra.mxu0 %vm270_vm0, %v180_v6  ;;  %v210_v44 = vld [vmem:[%s3078_s2] sm:$0xff]  ;;  %v216_v52 = vld [vmem:[%s3078_s2 + $0x30] sm:$0xff]  ;;  %v205_v55 = vld [vmem:[%s3077_s1 + $0x28] sm:$0xff] }
  0x21   : > { %1800 = vmatpush.xpose.msk.msra.mxu1 %vm270_vm0, %v196_v7  ;;  %222 = vperm.xlu2 %1894, %v210_v44   ;;  %v1530_v47 = vld [vmem:[%s3078_s2 + $0x80] sm:$0xff]  ;;  %v1334_v54 = vld [vmem:[%s3078_s2 + $0x70] sm:$0xff]  ;;  %v1531_v56 = vld [vmem:[%s3078_s2 + $0x88] sm:$0x1] }
  0x22   : > { %864 = vperm.xlu0 %1892, %v855_v27   ;;  %v856_v48 = vld [vmem:[%s3078_s2 + $0x60] sm:$0xf]  ;;  %v206_v57 = vld [vmem:[%s3077_s1 + $0x30] sm:$0xff]  ;;  %v207_v58 = vld [vmem:[%s3077_s1 + $0x38] sm:$0xff] }
  0x23   : > { %859 = vperm.xlu1 %1893, %v854_v32   ;;  %v204_v53 = vld [vmem:[%s3077_s1 + $0x20] sm:$0xff]  ;;  %v209_v60 = vld [vmem:[%s3077_s1 + $0x48] sm:$0xff] }
  0x24   : > { %1775 = vmatpush.xpose.msk.msra.mxu0 %vm270_vm0, %v179_v8  ;;  %v208_v59 = vld [vmem:[%s3077_s1 + $0x40] sm:$0xff] }
  0x25   : > { %1801 = vmatpush.xpose.msk.msra.mxu1 %vm270_vm0, %v195_v9 }
  0x28   : > { %1776 = vmatpush.xpose.msk.msra.mxu0 %vm270_vm0, %v178_v10 }
  0x29   : > { %1802 = vmatpush.xpose.msk.msra.mxu1 %vm270_vm0, %v194_v11  ;;  %869 = vperm.xlu2 %1894, %v856_v48  }
  0x2a   : > { %262 = vperm.xlu0 %1892, %v218_v33  }
  0x2b   : > { %257 = vperm.xlu1 %1893, %v217_v38  }
  0x2c   : > { %1777 = vmatpush.xpose.msk.msra.mxu0 %vm270_vm0, %v177_v12 }
  0x2d   : > { %1803 = vmatpush.xpose.msk.msra.mxu1 %vm270_vm0, %v193_v13 }
  0x30   : > { %1778 = vmatpush.xpose.msk.msra.mxu0 %vm270_vm0, %v176_v15 }
  0x31   : > { %1804 = vmatpush.xpose.msk.msra.mxu1 %vm270_vm0, %v192_v16  ;;  %267 = vperm.xlu2 %1894, %v219_v50  }
  0x32   : > { %247 = vperm.xlu0 %1892, %v215_v39  }
  0x33   : > { %1348 = vperm.xlu1 %1893, %v1335_v43  }
  0x34   : > { %1779 = vmatpush.xpose.msk.msra.mxu0 %vm270_vm0, %v175_v18 }
  0x35   : > { %1805 = vmatpush.xpose.msk.msra.mxu1 %vm270_vm0, %v191_v19 }
  0x38   : > { %1780 = vmatpush.xpose.msk.msra.mxu0 %vm270_vm0, %v174_v22 }
  0x39   : > { %1806 = vmatpush.xpose.msk.msra.mxu1 %vm270_vm0, %v190_v23  ;;  %252 = vperm.xlu2 %1894, %v216_v52  }
  0x3a   : > { %1338 = vperm.xlu0 %1892, %v1333_v45  }
  0x3b   : > { %1534 = vperm.xlu1 %1893, %v1530_v47  }
  0x3c   : > { %1781 = vmatpush.xpose.msk.msra.mxu0 %vm270_vm0, %v173_v24 }
  0x3d   : > { %1807 = vmatpush.xpose.msk.msra.mxu1 %vm270_vm0, %v189_v25 }
  0x40   : > { %1782 = vmatpush.xpose.msk.msra.mxu0 %vm270_vm0, %v172_v28 }
  0x41   : > { %1808 = vmatpush.xpose.msk.msra.mxu1 %vm270_vm0, %v188_v29  ;;  %1343 = vperm.xlu2 %1894, %v1334_v54  }
  0x44   : > { %1783 = vmatpush.xpose.msk.msra.mxu0 %vm270_vm0, %v171_v30 }
  0x45   : > { %1809 = vmatpush.xpose.msk.msra.mxu1 %vm270_vm0, %v187_v31 }
  0x48   : > { %1784 = vmatpush.xpose.msk.msra.mxu0 %vm270_vm0, %v170_v34 }
  0x49   : > { %1810 = vmatpush.xpose.msk.msra.mxu1 %vm270_vm0, %v186_v35  ;;  %1539 = vperm.xlu2 %1894, %v1531_v56  }
  0x4c   : > { %1785 = vmatpush.xpose.msk.msra.mxu0 %vm270_vm0, %v169_v36 }
  0x4d   : > { %1811 = vmatpush.xpose.msk.msra.mxu1 %vm270_vm0, %v185_v37 }
  0x50   : > { %1786 = vmatpush.xpose.msk.msra.mxu0 %vm270_vm0, %v168_v40 }
  0x51   : > { %1812 = vmatpush.xpose.msk.msra.mxu1 %vm270_vm0, %v184_v41 }
  0x53   : > { %1787 = vmatmul.msk.f32.vlgmr.msra.gmra.mxu0 %vm270_vm0, %v200_v42 }
  0x54   : > { %1813 = vmatmul.msk.f32.vlgmr.msra.gmra.mxu1 %vm270_vm0, %v200_v42 }
  0x5b   : > { %1788 = vmatmul.msk.f32.gmra.mxu0 %vm270_vm0, %v201_v46 }
  0x5c   : > { %1814 = vmatmul.msk.f32.gmra.mxu1 %vm270_vm0, %v201_v46 }
  0x63   : > { %1789 = vmatmul.msk.f32.gmra.mxu0 %vm270_vm0, %v202_v49 }
  0x64   : > { %1815 = vmatmul.msk.f32.gmra.mxu1 %vm270_vm0, %v202_v49 }
  0x6b   : > { %1790 = vmatmul.msk.f32.gmra.mxu0 %vm270_vm0, %v203_v51 }
  0x6c   : > { %1816 = vmatmul.msk.f32.gmra.mxu1 %vm270_vm0, %v203_v51 }
  0x73   : > { %1791 = vmatmul.msk.f32.gmra.mxu0 %vm270_vm0, %v204_v53 }
  0x74   : > { %1817 = vmatmul.msk.f32.gmra.mxu1 %vm270_vm0, %v204_v53 }
  0x7b   : > { %1792 = vmatmul.msk.f32.gmra.mxu0 %vm270_vm0, %v205_v55  ;;  %v223_v8 = vpop.permute.xlu2 %222 }
  0x7c   : > { %1818 = vmatmul.msk.f32.gmra.mxu1 %vm270_vm0, %v205_v55 }
  0x83   : > { %1793 = vmatmul.msk.f32.gmra.mxu0 %vm270_vm0, %v206_v57 }
  0x84   : > { %1819 = vmatmul.msk.f32.gmra.mxu1 %vm270_vm0, %v206_v57  ;;  %v243_v7 = vpop.permute.xlu0 %242 }
  0x85   : > { %v233_v61 = vpop.permute.xlu1 %232 }
  0x8b   : > { %1794 = vmatmul.msk.f32.gmra.mxu0 %vm270_vm0, %v207_v58 }
  0x8c   : > { %1820 = vmatmul.msk.f32.gmra.mxu1 %vm270_vm0, %v207_v58  ;;  %v238_v24 = vpop.permute.xlu0 %237 }
  0x8d   : > { %v228_v0 = vpop.permute.xlu1 %227 }
  0x93   : > { %1795 = vmatmul.msk.f32.gmra.mxu0 %vm270_vm0, %v208_v59 }
  0x94   : > { %1821 = vmatmul.msk.f32.gmra.mxu1 %vm270_vm0, %v208_v59 }
  0x9b   : > { %1796 = vmatmul.msk.f32.gmra.mxu0 %vm270_vm0, %v209_v60 }
  0x9c   : > { %1822 = vmatmul.msk.f32.gmra.mxu1 %vm270_vm0, %v209_v60 }
  0xd0   : > { %v414_v62 = vpop.f32.mrf.mxu0 }
  0xd1   : > { %v461_v63 = vpop.f32.mrf.mxu1  ;;  %v2333_v10 = vadd.f32 %v414_v62, %v223_v8 }
  0xd2   : > { %v2342_v23 = vadd.f32 %v461_v63, %v223_v8 }
  0xd3   : > { %v521_v19 = vand.u32 2147483647, %v2333_v10 }
  0xd4   : > { %v522_v32 = vand.u32 2147483647, %v2342_v23 }
  0xd5   : > { %v531_v27 = vsub.f32 0.0, %v521_v19 }
  0xd6   : > { %v532_v40 = vsub.f32 0.0, %v522_v32 }
  0xd7   : > { %v541_v36 = vmul.f32 1.442695, %v531_v27 }
  0xd8   : > { %v417_v1 = vpop.f32.mrf.mxu0  ;;  %v2363_v53 = vmul.f32 1.442695, %v532_v40 }
  0xd9   : > { %v464_v2 = vpop.f32.mrf.mxu1  ;;  %v2327_v3 = vadd.f32 %v417_v1, %v228_v0 }
  0xda   : > { %v2329_v4 = vadd.f32 %v464_v2, %v228_v0 }
  0xdb   : > { %v523_v5 = vand.u32 2147483647, %v2327_v3  ;;  %v493_v54 = vmax.f32 %v2327_v3, 0.0  ;;  %vm503_vm9 = vcmp.ne.f32.partialorder %v2327_v3, %v2327_v3 }
  0xdc   : > { %v524_v6 = vand.u32 2147483647, %v2329_v4  ;;  %v494_v59 = vmax.f32 %v2329_v4, 0.0  ;;  %vm504_vm0 = vcmp.ne.f32.partialorder %v2329_v4, %v2329_v4 }
  0xdd   : > { %v533_v9 = vsub.f32 0.0, %v523_v5 }
  0xde   : > { %v534_v11 = vsub.f32 0.0, %v524_v6 }
  0xdf   : > { %v545_v16 = vmul.f32 1.442695, %v533_v9 }
  0xe0   : > { %v420_v12 = vpop.f32.mrf.mxu0  ;;  %v547_v20 = vmul.f32 1.442695, %v534_v11 }
  0xe1   : > { %v467_v13 = vpop.f32.mrf.mxu1  ;;  %v2335_v14 = vadd.f32 %v420_v12, %v233_v61  ;;  %1895 = vpow2.f32 %v545_v16 }
  0xe2   : > { %v2337_v15 = vadd.f32 %v467_v13, %v233_v61  ;;  %1897 = vpow2.f32 %v547_v20 }
  0xe3   : > { %v525_v17 = vand.u32 2147483647, %v2335_v14  ;;  %v495_v2 = vmax.f32 %v2335_v14, 0.0  ;;  %vm505_vm2 = vcmp.ne.f32.partialorder %v2335_v14, %v2335_v14 }
  0xe4   : > { %v526_v18 = vand.u32 2147483647, %v2337_v15  ;;  %v496_v5 = vmax.f32 %v2337_v15, 0.0  ;;  %vm506_vm4 = vcmp.ne.f32.partialorder %v2337_v15, %v2337_v15 }
  0xe5   : > { %v535_v21 = vsub.f32 0.0, %v525_v17 }
  0xe6   : > { %v536_v22 = vsub.f32 0.0, %v526_v18 }
  0xe7   : > { %v549_v25 = vmul.f32 1.442695, %v535_v21  ;;  %v1896_v35 = vpop.eup %1895 }
  0xe8   : > { %v551_v26 = vmul.f32 1.442695, %v536_v22  ;;  %v423_v28 = vpop.f32.mrf.mxu0  ;;  %v2351_v39 = vpop.eup %1897  ;;  %v579_v44 = vadd.f32 1.0, %v1896_v35  ;;  %v582_v49 = vmul.f32 -0.5, %v1896_v35  ;;  %v585_v61 = vand.u32 2147483647, %v1896_v35 }
  0xe9   : > { %v470_v29 = vpop.f32.mrf.mxu1  ;;  %1899 = vpow2.f32 %v549_v25  ;;  %v2344_v30 = vadd.f32 %v423_v28, %v238_v24  ;;  %v588_v55 = vadd.f32 1.0, %v2351_v39  ;;  %v591_v0 = vmul.f32 -0.5, %v2351_v39 }
  0xea   : > { %v2346_v31 = vadd.f32 %v470_v29, %v238_v24  ;;  %1901 = vpow2.f32 %v551_v26  ;;  %v583_v60 = vadd.f32 1.0, %v582_v49  ;;  %vm2387_vm1 = vcmp.lt.f32.partialorder %v585_v61, 0.0004427343 }
  0xeb   : > { %v527_v33 = vand.u32 2147483647, %v2344_v30  ;;  %1903 = vpow2.f32 %v541_v36  ;;  %v497_v8 = vmax.f32 %v2344_v30, 0.0  ;;  %v592_v25 = vadd.f32 1.0, %v591_v0 }
  0xec   : > { %v528_v34 = vand.u32 2147483647, %v2346_v31  ;;  %v498_v16 = vmax.f32 %v2346_v31, 0.0  ;;  %v2385_v19 = vmul.f32 %v1896_v35, %v583_v60  ;;  %v594_v29 = vand.u32 2147483647, %v2351_v39 }
  0xed   : > { %v537_v37 = vsub.f32 0.0, %v527_v33  ;;  %vm507_vm6 = vcmp.ne.f32.partialorder %v2344_v30, %v2344_v30  ;;  %vm508_vm7 = vcmp.ne.f32.partialorder %v2346_v31, %v2346_v31 }
  0xee   : > { %v538_v38 = vsub.f32 0.0, %v528_v34  ;;  %vm2406_vm5 = vcmp.lt.f32.partialorder %v594_v29, 0.0004427343 }
  0xef   : > { %v2353_v41 = vpop.eup %1899  ;;  %v553_v42 = vmul.f32 1.442695, %v537_v37 }
  0xf0   : > { %v555_v43 = vmul.f32 1.442695, %v538_v38  ;;  %v2355_v45 = vpop.eup %1901  ;;  %v426_v46 = vpop.f32.mrf.mxu0  ;;  %v597_v48 = vadd.f32 1.0, %v2353_v41  ;;  %v600_v58 = vmul.f32 -0.5, %v2353_v41  ;;  %v603_v18 = vand.u32 2147483647, %v2353_v41 }
  0xf1   : > { %v473_v47 = vpop.f32.mrf.mxu1  ;;  %1905 = vpow2.f32 %v553_v42  ;;  %v2358_v50 = vadd.f32 %v426_v46, %v243_v7  ;;  %v606_v52 = vadd.f32 1.0, %v2355_v45  ;;  %v2372_v1 = vpop.eup %1903  ;;  %v609_v6 = vmul.f32 -0.5, %v2355_v45 }
  0xf2   : > { %v2360_v51 = vadd.f32 %v473_v47, %v243_v7  ;;  %1907 = vpow2.f32 %v555_v43  ;;  %v601_v12 = vadd.f32 1.0, %v600_v58  ;;  %v612_v35 = vand.u32 2147483647, %v2355_v45 }
  0xf3   : > { %v529_v56 = vand.u32 2147483647, %v2358_v50  ;;  %1909 = vlog2.f32 %v579_v44  ;;  %v610_v28 = vadd.f32 1.0, %v609_v6  ;;  %vm604_vm3 = vcmp.lt.f32.partialorder %v603_v18, 0.0004427343 }
  0xf4   : > { %v530_v57 = vand.u32 2147483647, %v2360_v51  ;;  %1911 = vlog2.f32 %v597_v48  ;;  %v602_v34 = vmul.f32 %v2353_v41, %v601_v12  ;;  %v561_v38 = vadd.f32 1.0, %v2372_v1 }
  0xf5   : > { %v539_v62 = vsub.f32 0.0, %v529_v56  ;;  %1913 = vlog2.f32 %v606_v52  ;;  %v2401_v44 = vmul.f32 -0.5, %v2372_v1  ;;  %v611_v41 = vmul.f32 %v2355_v45, %v610_v28 }
  0xf6   : > { %v540_v63 = vsub.f32 0.0, %v530_v57  ;;  %1915 = vlog2.f32 %v588_v55  ;;  %v499_v52 = vmax.f32 %v2358_v50, 0.0  ;;  %vm2415_vm8 = vcmp.lt.f32.partialorder %v612_v35, 0.0004427343 }
  0xf7   : > { %v2377_v7 = vpop.eup %1905  ;;  %v557_v9 = vmul.f32 1.442695, %v539_v62  ;;  %v593_v56 = vmul.f32 %v2351_v39, %v592_v25  ;;  %v500_v28 = vmax.f32 %v2360_v51, 0.0  ;;  %vm509_vm14 = vcmp.ne.f32.partialorder %v2358_v50, %v2358_v50 }
  0xf8   : > { %v559_v11 = vmul.f32 1.442695, %v540_v63  ;;  %v2380_v13 = vpop.eup %1907  ;;  %v615_v17 = vadd.f32 1.0, %v2377_v7  ;;  %v618_v22 = vmul.f32 -0.5, %v2377_v7  ;;  %v621_v60 = vand.u32 2147483647, %v2377_v7 }
  0xf9   : > { %v1910_v21 = vpop.eup %1909  ;;  %1917 = vpow2.f32 %v557_v9  ;;  %v624_v24 = vadd.f32 1.0, %v2380_v13  ;;  %v627_v27 = vmul.f32 -0.5, %v2380_v13  ;;  %v630_v61 = vand.u32 2147483647, %v2380_v13 }
  0xfa   : > { %v1912_v26 = vpop.eup %1911  ;;  %1919 = vpow2.f32 %v559_v11  ;;  %v619_v40 = vadd.f32 1.0, %v618_v22  ;;  %v581_v43 = vmul.f32 0.6931472, %v1910_v21  ;;  %vm622_vm10 = vcmp.lt.f32.partialorder %v621_v60, 0.0004427343 }
  0xfb   : > { %v1914_v32 = vpop.eup %1913  ;;  %1921 = vlog2.f32 %v615_v17  ;;  %v599_v33 = vmul.f32 0.6931472, %v1912_v26  ;;  %v628_v46 = vadd.f32 1.0, %v627_v27  ;;  %vm631_vm11 = vcmp.lt.f32.partialorder %v630_v61, 0.0004427343 }
  0xfc   : > { %v1916_v36 = vpop.eup %1915  ;;  %1923 = vlog2.f32 %v624_v24  ;;  %v608_v37 = vmul.f32 0.6931472, %v1914_v32  ;;  %v620_v6 = vmul.f32 %v2377_v7, %v619_v40  ;;  %v587_v9 = vsel %vm2387_vm1, %v2385_v19, %v581_v43 }
  0xfd   : > { %v605_v42 = vsel %vm604_vm3, %v602_v34, %v599_v33  ;;  %v590_v45 = vmul.f32 0.6931472, %v1916_v36  ;;  %v629_v12 = vmul.f32 %v2380_v13, %v628_v46  ;;  %v653_v19 = vadd.f32 %v587_v9, %v493_v54 }
  0xfe   : > { %v655_v47 = vadd.f32 %v605_v42, %v495_v2  ;;  %v614_v62 = vsel %vm2415_vm8, %v611_v41, %v608_v37  ;;  %vm510_vm15 = vcmp.ne.f32.partialorder %v2360_v51, %v2360_v51  ;;  %v565_v60 = vadd.f32 1.0, %v2401_v44 }
  0xff   : > { %v1918_v49 = vpop.eup %1917  ;;  %v656_v7 = vadd.f32 %v614_v62, %v496_v5  ;;  %v596_v5 = vsel %vm2406_vm5, %v593_v56, %v590_v45  ;;  %vm882_vm3 = vcmask 1043456  }
 0x100   : > { %v1920_v57 = vpop.eup %1919  ;;  %v633_v58 = vadd.f32 1.0, %v1918_v49  ;;  %v636_v0 = vmul.f32 -0.5, %v1918_v49  ;;  %v2435_v17 = vsel %vm505_vm2, %v2335_v14, %v655_v47  ;;  %v639_v22 = vand.u32 2147483647, %v1918_v49 }
 0x101   : > { %v1922_v63 = vpop.eup %1921  ;;  %v642_v2 = vadd.f32 1.0, %v1920_v57  ;;  %v645_v39 = vmul.f32 -0.5, %v1920_v57  ;;  %v705_v25 = vand.u32 2147483647, %v2435_v17  ;;  %v648_v29 = vand.u32 2147483647, %v1920_v57 }
 0x102   : > { %v1924_v11 = vpop.eup %1923  ;;  %1925 = vlog2.f32 %v633_v58  ;;  %v617_v18 = vmul.f32 0.6931472, %v1922_v63  ;;  %v637_v20 = vadd.f32 1.0, %v636_v0  ;;  %v2453_v54 = vsel %vm506_vm4, %v2337_v15, %v656_v7 }
 0x103   : > { %1927 = vlog2.f32 %v642_v2  ;;  %v626_v21 = vmul.f32 0.6931472, %v1924_v11  ;;  %v646_v26 = vadd.f32 1.0, %v645_v39  ;;  %v715_v33 = vsub.f32 0.0, %v705_v25 }
 0x104   : > { %v623_v13 = vsel %vm622_vm10, %v620_v6, %v617_v18  ;;  %1929 = vlog2.f32 %v561_v38  ;;  %v2471_v15 = vsel %vm503_vm9, %v2327_v3, %v653_v19  ;;  %v638_v36 = vmul.f32 %v1918_v49, %v637_v20 }
 0x105   : > { %v632_v24 = vsel %vm631_vm11, %v629_v12, %v626_v21  ;;  %v657_v14 = vadd.f32 %v623_v13, %v497_v8  ;;  %vm640_vm12 = vcmp.lt.f32.partialorder %v639_v22, 0.0004427343  ;;  %v647_v38 = vmul.f32 %v1920_v57, %v646_v26 }
 0x106   : > { %v658_v27 = vadd.f32 %v632_v24, %v498_v16  ;;  %vm649_vm13 = vcmp.lt.f32.partialorder %v648_v29, 0.0004427343  ;;  %v703_v3 = vand.u32 2147483647, %v2471_v15  ;;  %v729_v48 = vmul.f32 1.442695, %v715_v33 }
 0x107   : > { %v2459_v8 = vsel %vm507_vm6, %v2344_v30, %v657_v14  ;;  %v654_v30 = vadd.f32 %v596_v5, %v494_v59  ;;  %v491_v63 = vmax.f32 %v2333_v10, 0.0  ;;  %v492_v0 = vmax.f32 %v2342_v23, 0.0 }
 0x108   : > { %v1926_v32 = vpop.eup %1925  ;;  %v2465_v16 = vsel %vm508_vm7, %v2346_v31, %v658_v27  ;;  %v707_v40 = vand.u32 2147483647, %v2459_v8  ;;  %v706_v31 = vand.u32 2147483647, %v2453_v54  ;;  %1931 = vpow2.f32 %v729_v48 }
 0x109   : > { %v1928_v34 = vpop.eup %1927  ;;  %v635_v35 = vmul.f32 0.6931472, %v1926_v32  ;;  %v708_v43 = vand.u32 2147483647, %v2465_v16  ;;  %v713_v62 = vsub.f32 0.0, %v703_v3  ;;  %v2505_v7 = vmul.f32 %v2372_v1, %v565_v60 }
 0x10a   : > { %v644_v37 = vmul.f32 0.6931472, %v1928_v34  ;;  %v717_v41 = vsub.f32 0.0, %v707_v40  ;;  %v1930_v49 = vpop.eup %1929  ;;  %v716_v57 = vsub.f32 0.0, %v706_v31  ;;  %v567_v11 = vand.u32 2147483647, %v2372_v1 }
 0x10b   : > { %v641_v42 = vsel %vm640_vm12, %v638_v36, %v635_v35  ;;  %v718_v55 = vsub.f32 0.0, %v708_v43  ;;  %v2502_v12 = vmul.f32 0.6931472, %v1930_v49  ;;  %v725_v21 = vmul.f32 1.442695, %v713_v62 }
 0x10c   : > { %v659_v46 = vadd.f32 %v641_v42, %v499_v52  ;;  %v650_v47 = vsel %vm649_vm13, %v647_v38, %v644_v37  ;;  %v733_v56 = vmul.f32 1.442695, %v717_v41  ;;  %v731_v9 = vmul.f32 1.442695, %v716_v57 }
 0x10d   : > { %v660_v59 = vadd.f32 %v650_v47, %v500_v28  ;;  %v735_v6 = vmul.f32 1.442695, %v718_v55  ;;  %v673_v19 = vmax.f32 %v2471_v15, 0.0  ;;  %v676_v25 = vmax.f32 %v2453_v54, 0.0 }
 0x10e   : > { %v2484_v45 = vsel %vm509_vm14, %v2358_v50, %v659_v46  ;;  %1933 = vpow2.f32 %v733_v56  ;;  %v2495_v50 = vsel %vm504_vm0, %v2329_v4, %v654_v30  ;;  %v1932_v4 = vpop.eup %1931  ;;  %v677_v1 = vmax.f32 %v2459_v8, 0.0 }
 0x10f   : > { %v709_v52 = vand.u32 2147483647, %v2484_v45  ;;  %v2488_v58 = vsel %vm510_vm15, %v2360_v51, %v660_v59  ;;  %1935 = vpow2.f32 %v2363_v53  ;;  %v704_v39 = vand.u32 2147483647, %v2495_v50 }
 0x110   : > { %v710_v61 = vand.u32 2147483647, %v2488_v58  ;;  %1937 = vpow2.f32 %v735_v6  ;;  %v675_v53 = vmax.f32 %v2435_v17, 0.0  ;;  %v777_v22 = vadd.f32 1.0, %v1932_v4 }
 0x111   : > { %v719_v2 = vsub.f32 0.0, %v709_v52  ;;  %1939 = vpow2.f32 %v731_v9  ;;  %v780_v13 = vmul.f32 -0.5, %v1932_v4  ;;  %v783_v24 = vand.u32 2147483647, %v1932_v4 }
 0x112   : > { %v720_v51 = vsub.f32 0.0, %v710_v61  ;;  %v714_v27 = vsub.f32 0.0, %v704_v39  ;;  %v678_v28 = vmax.f32 %v2465_v16, 0.0  ;;  %vm2514_vm1 = vcmp.lt.f32.partialorder %v567_v11, 0.0004427343 }
 0x113   : > { %v737_v44 = vmul.f32 1.442695, %v719_v2  ;;  %v679_v33 = vmax.f32 %v2484_v45, 0.0  ;;  %v680_v34 = vmax.f32 %v2488_v58, 0.0  ;;  %v569_v35 = vsel %vm2514_vm1, %v2505_v7, %v2502_v12 }
 0x114   : > { %v739_v18 = vmul.f32 1.442695, %v720_v51  ;;  %v1934_v20 = vpop.eup %1933  ;;  %v781_v40 = vadd.f32 1.0, %v780_v13  ;;  %vm2526_vm2 = vcmp.lt.f32.partialorder %v783_v24, 0.0004427343  ;;  %vm501_vm4 = vcmp.ne.f32.partialorder %v2333_v10, %v2333_v10 }
 0x115   : > { %1941 = vpow2.f32 %v737_v44  ;;  %v795_v26 = vadd.f32 1.0, %v1934_v20  ;;  %v798_v14 = vmul.f32 -0.5, %v1934_v20  ;;  %v2510_v5 = vpop.eup %1935  ;;  %v801_v37 = vand.u32 2147483647, %v1934_v20 }
 0x116   : > { %1943 = vpow2.f32 %v739_v18  ;;  %v1938_v32 = vpop.eup %1937  ;;  %v727_v3 = vmul.f32 1.442695, %v714_v27  ;;  %v2531_v46 = vadd.f32 1.0, %v2510_v5  ;;  %v782_v2 = vmul.f32 %v1932_v4, %v781_v40 }
 0x117   : > { %1945 = vlog2.f32 %v777_v22  ;;  %v2524_v36 = vpop.eup %1939  ;;  %v799_v30 = vadd.f32 1.0, %v798_v14  ;;  %v804_v38 = vadd.f32 1.0, %v1938_v32  ;;  %v807_v42 = vmul.f32 -0.5, %v1938_v32 }
 0x118   : > { %1947 = vpow2.f32 %v725_v21  ;;  %v786_v49 = vadd.f32 1.0, %v2524_v36  ;;  %v789_v52 = vmul.f32 -0.5, %v2524_v36  ;;  %v810_v62 = vand.u32 2147483647, %v1938_v32 }
 0x119   : > { %1949 = vlog2.f32 %v795_v26  ;;  %v800_v61 = vmul.f32 %v1934_v20, %v799_v30  ;;  %v808_v11 = vadd.f32 1.0, %v807_v42  ;;  %vm689_vm5 = vcmp.ne.f32.partialorder %v2484_v45, %v2484_v45 }
 0x11a   : > { %1951 = vlog2.f32 %v804_v38  ;;  %vm2545_vm7 = vcmp.lt.f32.partialorder %v801_v37, 0.0004427343  ;;  %v790_v22 = vadd.f32 1.0, %v789_v52  ;;  %vm690_vm8 = vcmp.ne.f32.partialorder %v2488_v58, %v2488_v58 }
 0x11b   : > { %v1942_v31 = vpop.eup %1941  ;;  %vm2554_vm9 = vcmp.lt.f32.partialorder %v810_v62, 0.0004427343  ;;  %vm687_vm11 = vcmp.ne.f32.partialorder %v2459_v8, %v2459_v8  ;;  %v809_v40 = vmul.f32 %v1938_v32, %v808_v11  ;;  %vm685_vm12 = vcmp.ne.f32.partialorder %v2435_v17, %v2435_v17 }
 0x11c   : > { %v1944_v47 = vpop.eup %1943  ;;  %v813_v41 = vadd.f32 1.0, %v1942_v31  ;;  %v816_v48 = vmul.f32 -0.5, %v1942_v31  ;;  %v819_v55 = vand.u32 2147483647, %v1942_v31  ;;  %v792_v43 = vand.u32 2147483647, %v2524_v36 }
 0x11d   : > { %v1946_v59 = vpop.eup %1945  ;;  %v822_v56 = vadd.f32 1.0, %v1944_v47  ;;  %v825_v57 = vmul.f32 -0.5, %v1944_v47  ;;  %v828_v9 = vand.u32 2147483647, %v1944_v47  ;;  %v791_v32 = vmul.f32 %v2524_v36, %v790_v22 }
 0x11e   : > { %v2535_v60 = vpop.eup %1947  ;;  %1953 = vlog2.f32 %v813_v41  ;;  %v817_v51 = vadd.f32 1.0, %v816_v48  ;;  %v779_v18 = vmul.f32 0.6931472, %v1946_v59  ;;  %vm2541_vm6 = vcmp.lt.f32.partialorder %v819_v55, 0.0004427343 }
 0x11f   : > { %v1950_v6 = vpop.eup %1949  ;;  %1955 = vlog2.f32 %v822_v56  ;;  %v826_v44 = vadd.f32 1.0, %v825_v57  ;;  %v759_v20 = vadd.f32 1.0, %v2535_v60  ;;  %v762_v27 = vmul.f32 -0.5, %v2535_v60 }
 0x120   : > { %v797_v39 = vmul.f32 0.6931472, %v1950_v6  ;;  %1957 = vlog2.f32 %v786_v49  ;;  %v1952_v13 = vpop.eup %1951  ;;  %v785_v14 = vsel %vm2526_vm2, %v782_v2, %v779_v18  ;;  %v818_v30 = vmul.f32 %v1942_v31, %v817_v51 }
 0x121   : > { %vm2561_vm10 = vcmp.lt.f32.partialorder %v828_v9, 0.0004427343  ;;  %v806_v38 = vmul.f32 0.6931472, %v1952_v13  ;;  %v827_v41 = vmul.f32 %v1944_v47, %v826_v44  ;;  %1959 = vlog2.f32 %v759_v20 }
 0x122   : > { %v803_v24 = vsel %vm2545_vm7, %v800_v61, %v797_v39  ;;  %v765_v48 = vand.u32 2147483647, %v2535_v60  ;;  %v835_v55 = vadd.f32 %v785_v14, %v675_v53  ;;  %vm686_vm13 = vcmp.ne.f32.partialorder %v2453_v54, %v2453_v54 }
 0x123   : > { %v837_v59 = vadd.f32 %v803_v24, %v677_v1  ;;  %v812_v47 = vsel %vm2554_vm9, %v809_v40, %v806_v38  ;;  %v763_v52 = vadd.f32 1.0, %v762_v27  ;;  %1961 = vpow2.f32 %v727_v3 }
 0x124   : > { %v1954_v42 = vpop.eup %1953  ;;  %v651_v53 = vadd.f32 %v569_v35, %v491_v63  ;;  %1963 = vlog2.f32 %v2531_v46  ;;  %vm793_vm14 = vcmp.lt.f32.partialorder %v792_v43, 0.0004427343  ;;  %v573_v3 = vmul.f32 -0.5, %v2510_v5 }
 0x125   : > { %v1956_v31 = vpop.eup %1955  ;;  %v815_v49 = vmul.f32 0.6931472, %v1954_v42  ;;  %v838_v29 = vadd.f32 %v812_v47, %v678_v28  ;;  %v576_v28 = vand.u32 2147483647, %v2510_v5  ;;  %vm688_vm15 = vcmp.ne.f32.partialorder %v2465_v16, %v2465_v16 }
 0x126   : > { %v1958_v56 = vpop.eup %1957  ;;  %v824_v57 = vmul.f32 0.6931472, %v1956_v31  ;;  %v2603_v63 = vsel %vm501_vm4, %v2333_v10, %v651_v53  ;;  %v574_v51 = vadd.f32 1.0, %v573_v3  ;;  %vm766_vm0 = vcmp.lt.f32.partialorder %v765_v48, 0.0004427343 }
 0x127   : > { %v821_v61 = vsel %vm2541_vm6, %v818_v30, %v815_v49  ;;  %v788_v62 = vmul.f32 0.6931472, %v1958_v56  ;;  %v1960_v12 = vpop.eup %1959  ;;  %v701_v46 = vand.u32 2147483647, %v2603_v63  ;;  %vm683_vm1 = vcmp.ne.f32.partialorder %v2471_v15, %v2471_v15 }
 0x128   : > { %v839_v1 = vadd.f32 %v821_v61, %v679_v33  ;;  %v830_v36 = vsel %vm2561_vm10, %v827_v41, %v824_v57  ;;  %v761_v35 = vmul.f32 0.6931472, %v1960_v12  ;;  %v575_v4 = vmul.f32 %v2510_v5, %v574_v51  ;;  %v851_v61 = vld [vmem:[%s3077_s1 + $0x50] sm:$0xff]  ;;  %v852_v12 = vld [vmem:[%s3077_s1 + $0x58] sm:$0xff] }
 0x129   : > { %v840_v2 = vadd.f32 %v830_v36, %v680_v34  ;;  %v794_v6 = vsel %vm793_vm14, %v791_v32, %v788_v62  ;;  %v764_v34 = vmul.f32 %v2535_v60, %v763_v52  ;;  %v1962_v9 = vpop.eup %1961  ;;  %v848_v60 = vsel %vm688_vm15, %v2465_v16, %v838_v29 }
 0x12a   : > { %v849_v7 = vsel %vm689_vm5, %v2484_v45, %v839_v1  ;;  %v836_v33 = vadd.f32 %v794_v6, %v676_v25  ;;  %v847_v45 = vsel %vm687_vm11, %v2459_v8, %v837_v59  ;;  %v1964_v25 = vpop.eup %1963  ;;  %v768_v44 = vadd.f32 1.0, %v1962_v9 }
 0x12b   : > { %1823 = vmatpush.msk.msra.mxu2 %vm882_vm3, %v849_v7  ;;  %v850_v10 = vsel %vm690_vm8, %v2488_v58, %v840_v2  ;;  %v845_v58 = vsel %vm685_vm12, %v2435_v17, %v835_v55  ;;  %v767_v11 = vsel %vm766_vm0, %v764_v34, %v761_v35  ;;  %v771_v39 = vmul.f32 -0.5, %v1962_v9  ;;  %v865_v35 = vpop.permute.xlu0 %864 }
 0x12c   : > { %1827 = vmatpush.msk.msra.mxu3 %vm882_vm3, %v850_v10  ;;  %v833_v8 = vadd.f32 %v767_v11, %v673_v19  ;;  %v711_v18 = vsub.f32 0.0, %v701_v46  ;;  %v572_v21 = vmul.f32 0.6931472, %v1964_v25  ;;  %v846_v17 = vsel %vm686_vm13, %v2453_v54, %v836_v33  ;;  %v860_v33 = vpop.permute.xlu1 %859 }
 0x12d   : > { %901 = vmatpush.msra.mxu2 %v847_v45  ;;  %1965 = vlog2.f32 %v768_v44  ;;  %vm577_vm2 = vcmp.lt.f32.partialorder %v576_v28, 0.0004427343  ;;  %v772_v20 = vadd.f32 1.0, %v771_v39  ;;  %vm502_vm4 = vcmp.ne.f32.partialorder %v2342_v23, %v2342_v23  ;;  %v870_v39 = vpop.permute.xlu2 %869 }
 0x12e   : > { %927 = vmatpush.msra.mxu3 %v848_v60  ;;  %v843_v16 = vsel %vm683_vm1, %v2471_v15, %v833_v8  ;;  %v721_v22 = vmul.f32 1.442695, %v711_v18  ;;  %v578_v19 = vsel %vm577_vm2, %v575_v4, %v572_v21  ;;  %v774_v54 = vand.u32 2147483647, %v1962_v9 }
 0x12f   : > { %902 = vmatpush.msra.mxu2 %v845_v58  ;;  %v652_v5 = vadd.f32 %v578_v19, %v492_v0  ;;  %v773_v27 = vmul.f32 %v1962_v9, %v772_v20  ;;  %v674_v15 = vmax.f32 %v2495_v50, 0.0  ;;  %vm684_vm6 = vcmp.ne.f32.partialorder %v2495_v50, %v2495_v50 }
 0x130   : > { %928 = vmatpush.msra.mxu3 %v846_v17  ;;  %1967 = vpow2.f32 %v721_v22  ;;  %vm775_vm5 = vcmp.lt.f32.partialorder %v774_v54, 0.0004427343  ;;  %v671_v57 = vmax.f32 %v2603_v63, 0.0  ;;  %vm681_vm8 = vcmp.ne.f32.partialorder %v2603_v63, %v2603_v63 }
 0x131   : > { %903 = vmatpush.msra.mxu2 %v843_v16  ;;  %v662_v13 = vsel %vm502_vm4, %v2342_v23, %v652_v5  ;;  %vm872_vm9 = vcmask 293888  }
 0x132   : > { %v702_v24 = vand.u32 2147483647, %v662_v13  ;;  %v672_v2 = vmax.f32 %v662_v13, 0.0  ;;  %vm682_vm11 = vcmp.ne.f32.partialorder %v662_v13, %v662_v13 }
 0x133   : > { %v1966_v26 = vpop.eup %1965 }
 0x134   : > { %v770_v14 = vmul.f32 0.6931472, %v1966_v26  ;;  %v712_v30 = vsub.f32 0.0, %v702_v24 }
 0x136   : > { %v1968_v37 = vpop.eup %1967  ;;  %v776_v38 = vsel %vm775_vm5, %v773_v27, %v770_v14  ;;  %v723_v40 = vmul.f32 1.442695, %v712_v30 }
 0x137   : > { %v834_v0 = vadd.f32 %v776_v38, %v674_v15  ;;  %v741_v42 = vadd.f32 1.0, %v1968_v37  ;;  %v744_v41 = vmul.f32 -0.5, %v1968_v37  ;;  %v747_v48 = vand.u32 2147483647, %v1968_v37 }
 0x138   : > { %1969 = vpow2.f32 %v723_v40 }
 0x139   : > { %v844_v23 = vsel %vm684_vm6, %v2495_v50, %v834_v0  ;;  %1971 = vlog2.f32 %v741_v42  ;;  %v745_v43 = vadd.f32 1.0, %v744_v41  ;;  %vm748_vm7 = vcmp.lt.f32.partialorder %v747_v48, 0.0004427343 }
 0x13a   : > { %929 = vmatpush.msra.mxu3 %v844_v23  ;;  %vm1054_vm6 = vcmask 162816  }
 0x13b   : > { %v746_v32 = vmul.f32 %v1968_v37, %v745_v43 }
 0x13e   : > { %v1970_v31 = vpop.eup %1969 }
 0x13f   : > { %v1972_v49 = vpop.eup %1971  ;;  %v750_v59 = vadd.f32 1.0, %v1970_v31  ;;  %v753_v56 = vmul.f32 -0.5, %v1970_v31  ;;  %v756_v53 = vand.u32 2147483647, %v1970_v31 }
 0x140   : > { %v743_v55 = vmul.f32 0.6931472, %v1972_v49 }
 0x141   : > { %1973 = vlog2.f32 %v750_v59  ;;  %v754_v50 = vadd.f32 1.0, %v753_v56  ;;  %vm757_vm10 = vcmp.lt.f32.partialorder %v756_v53, 0.0004427343 }
 0x142   : > { %v749_v47 = vsel %vm748_vm7, %v746_v32, %v743_v55 }
 0x143   : > { %v831_v52 = vadd.f32 %v749_v47, %v671_v57  ;;  %v755_v3 = vmul.f32 %v1970_v31, %v754_v50 }
 0x145   : > { %v841_v62 = vsel %vm681_vm8, %v2603_v63, %v831_v52  ;;  %v853_v63 = vld [vmem:[%s3077_s1 + $0x60] sm:$0xf] }
 0x146   : > { %904 = vmatpush.msra.mxu2 %v841_v62 }
 0x147   : > { %v1974_v1 = vpop.eup %1973  ;;  %1824 = vmatmul.msk.f32.vlgmr.msra.gmra.mxu2 %vm872_vm9, %v851_v61 }
 0x148   : > { %v752_v36 = vmul.f32 0.6931472, %v1974_v1 }
 0x14a   : > { %v758_v29 = vsel %vm757_vm10, %v755_v3, %v752_v36 }
 0x14b   : > { %v832_v6 = vadd.f32 %v758_v29, %v672_v2 }
 0x14d   : > { %v842_v7 = vsel %vm682_vm11, %v662_v13, %v832_v6 }
 0x14e   : > { %930 = vmatpush.msra.mxu3 %v842_v7 }
 0x14f   : > { %1828 = vmatmul.msk.f32.vlgmr.msra.gmra.mxu3 %vm872_vm9, %v851_v61  ;;  %1825 = vmatmul.msk.f32.gmra.mxu2 %vm872_vm9, %v852_v12 }
 0x157   : > { %1829 = vmatmul.msk.f32.gmra.mxu3 %vm872_vm9, %v852_v12  ;;  %1826 = vmatmul.msk.f32.gmra.mxu2 %vm872_vm9, %v853_v63 }
 0x15f   : > { %1830 = vmatmul.msk.f32.gmra.mxu3 %vm872_vm9, %v853_v63 }
 0x1ca   : > { %v906_v34 = vpop.f32.mrf.mxu2 }
 0x1cb   : > { %v2669_v28 = vadd.f32 %v906_v34, %v860_v33 }
 0x1cd   : > { %v959_v10 = vand.u32 2147483647, %v2669_v28  ;;  %vm947_vm4 = vcmp.ne.f32.partialorder %v2669_v28, %v2669_v28 }
 0x1cf   : > { %v965_v9 = vsub.f32 0.0, %v959_v10 }
 0x1d1   : > { %v971_v11 = vmul.f32 1.442695, %v965_v9 }
 0x1d2   : > { %v932_v46 = vpop.f32.mrf.mxu3  ;;  %v909_v51 = vpop.f32.mrf.mxu2 }
 0x1d3   : > { %v2672_v45 = vadd.f32 %v932_v46, %v860_v33  ;;  %v2674_v58 = vadd.f32 %v909_v51, %v865_v35  ;;  %1975 = vpow2.f32 %v971_v11 }
 0x1d5   : > { %v961_v25 = vand.u32 2147483647, %v2674_v58  ;;  %v960_v60 = vand.u32 2147483647, %v2672_v45  ;;  %v943_v33 = vmax.f32 %v2674_v58, 0.0  ;;  %vm949_vm0 = vcmp.ne.f32.partialorder %v2674_v58, %v2674_v58 }
 0x1d6   : > { %vm948_vm9 = vcmp.ne.f32.partialorder %v2672_v45, %v2672_v45 }
 0x1d7   : > { %v967_v44 = vsub.f32 0.0, %v961_v25  ;;  %v966_v18 = vsub.f32 0.0, %v960_v60  ;;  %v941_v60 = vmax.f32 %v2669_v28, 0.0 }
 0x1d9   : > { %v975_v8 = vmul.f32 1.442695, %v967_v44  ;;  %v973_v5 = vmul.f32 1.442695, %v966_v18  ;;  %v1976_v13 = vpop.eup %1975 }
 0x1da   : > { %v935_v21 = vpop.f32.mrf.mxu3  ;;  %v912_v4 = vpop.f32.mrf.mxu2  ;;  %v983_v38 = vadd.f32 1.0, %v1976_v13  ;;  %v986_v49 = vmul.f32 -0.5, %v1976_v13  ;;  %v989_v3 = vand.u32 2147483647, %v1976_v13 }
 0x1db   : > { %v2678_v17 = vadd.f32 %v935_v21, %v865_v35  ;;  %v2680_v16 = vadd.f32 %v912_v4, %v870_v39  ;;  %1977 = vpow2.f32 %v975_v8 }
 0x1dc   : > { %1979 = vpow2.f32 %v973_v5  ;;  %v987_v52 = vadd.f32 1.0, %v986_v49  ;;  %vm2704_vm14 = vcmp.lt.f32.partialorder %v989_v3, 0.0004427343 }
 0x1dd   : > { %v962_v22 = vand.u32 2147483647, %v2678_v17  ;;  %v963_v19 = vand.u32 2147483647, %v2680_v16  ;;  %v945_v53 = vmax.f32 %v2680_v16, 0.0  ;;  %vm951_vm15 = vcmp.ne.f32.partialorder %v2680_v16, %v2680_v16 }
 0x1de   : > { %v988_v10 = vmul.f32 %v1976_v13, %v987_v52  ;;  %vm950_vm8 = vcmp.ne.f32.partialorder %v2678_v17, %v2678_v17  ;;  %v476_v52 = vpop.f32.mrf.mxu1 }
 0x1df   : > { %v968_v20 = vsub.f32 0.0, %v962_v22  ;;  %v969_v54 = vsub.f32 0.0, %v963_v19 }
 0x1e1   : > { %v977_v24 = vmul.f32 1.442695, %v968_v20  ;;  %v979_v26 = vmul.f32 1.442695, %v969_v54  ;;  %v1978_v14 = vpop.eup %1977 }
 0x1e2   : > { %v938_v27 = vpop.f32.mrf.mxu3  ;;  %v1001_v15 = vadd.f32 1.0, %v1978_v14  ;;  %v2687_v0 = vpop.eup %1979  ;;  %v1004_v43 = vmul.f32 -0.5, %v1978_v14  ;;  %v1007_v47 = vand.u32 2147483647, %v1978_v14 }
 0x1e3   : > { %1981 = vpow2.f32 %v977_v24  ;;  %v2684_v30 = vadd.f32 %v938_v27, %v870_v39  ;;  %v992_v55 = vadd.f32 1.0, %v2687_v0  ;;  %v995_v12 = vmul.f32 -0.5, %v2687_v0 }
 0x1e4   : > { %1983 = vpow2.f32 %v979_v26  ;;  %v1005_v56 = vadd.f32 1.0, %v1004_v43  ;;  %vm2697_vm12 = vcmp.lt.f32.partialorder %v1007_v47, 0.0004427343  ;;  %v998_v54 = vand.u32 2147483647, %v2687_v0  ;;  %v1049_v43 = vld [vmem:[%s3077_s1 + $0x68] sm:$0xff]  ;;  %v429_v47 = vpop.f32.mrf.mxu0 }
 0x1e5   : > { %v964_v37 = vand.u32 2147483647, %v2684_v30  ;;  %1985 = vlog2.f32 %v1001_v15  ;;  %v996_v21 = vadd.f32 1.0, %v995_v12  ;;  %v946_v15 = vmax.f32 %v2684_v30, 0.0  ;;  %v258_v12 = vpop.permute.xlu1 %257 }
 0x1e6   : > { %1987 = vlog2.f32 %v983_v38  ;;  %v1006_v29 = vmul.f32 %v1978_v14, %v1005_v56  ;;  %vm999_vm5 = vcmp.lt.f32.partialorder %v998_v54, 0.0004427343  ;;  %vm952_vm7 = vcmp.ne.f32.partialorder %v2684_v30, %v2684_v30 }
 0x1e7   : > { %v970_v40 = vsub.f32 0.0, %v964_v37  ;;  %v944_v37 = vmax.f32 %v2678_v17, 0.0 }
 0x1e9   : > { %v2689_v42 = vpop.eup %1981  ;;  %v981_v41 = vmul.f32 1.442695, %v970_v40  ;;  %v997_v40 = vmul.f32 %v2687_v0, %v996_v21 }
 0x1ea   : > { %v1984_v23 = vpop.eup %1983  ;;  %v1010_v48 = vadd.f32 1.0, %v2689_v42  ;;  %v1013_v36 = vmul.f32 -0.5, %v2689_v42  ;;  %v1016_v8 = vand.u32 2147483647, %v2689_v42 }
 0x1eb   : > { %1989 = vpow2.f32 %v981_v41  ;;  %v1019_v31 = vadd.f32 1.0, %v1984_v23  ;;  %v1022_v59 = vmul.f32 -0.5, %v1984_v23  ;;  %v1986_v32 = vpop.eup %1985  ;;  %v1025_v1 = vand.u32 2147483647, %v1984_v23 }
 0x1ec   : > { %v1988_v57 = vpop.eup %1987  ;;  %v1003_v61 = vmul.f32 0.6931472, %v1986_v32  ;;  %v1014_v25 = vadd.f32 1.0, %v1013_v36  ;;  %vm2721_vm1 = vcmp.lt.f32.partialorder %v1016_v8, 0.0004427343 }
 0x1ed   : > { %1991 = vlog2.f32 %v1019_v31  ;;  %v1023_v50 = vadd.f32 1.0, %v1022_v59  ;;  %v985_v6 = vmul.f32 0.6931472, %v1988_v57  ;;  %vm1026_vm13 = vcmp.lt.f32.partialorder %v1025_v1, 0.0004427343  ;;  %v1050_v57 = vld [vmem:[%s3077_s1 + $0x70] sm:$0xff] }
 0x1ee   : > { %1993 = vlog2.f32 %v1010_v48  ;;  %v1009_v9 = vsel %vm2697_vm12, %v1006_v29, %v1003_v61  ;;  %v1015_v24 = vmul.f32 %v2689_v42, %v1014_v25  ;;  %v942_v59 = vmax.f32 %v2672_v45, 0.0 }
 0x1ef   : > { %1995 = vlog2.f32 %v992_v55  ;;  %v1024_v51 = vmul.f32 %v1984_v23, %v1023_v50  ;;  %v991_v18 = vsel %vm2704_vm14, %v988_v10, %v985_v6  ;;  %v1039_v19 = vadd.f32 %v1009_v9, %v943_v33  ;;  %v432_v50 = vpop.f32.mrf.mxu0 }
 0x1f0   : > { %v1037_v26 = vadd.f32 %v991_v18, %v941_v60  ;;  %vm1361_vm12 = vcmask 1042432  }
 0x1f1   : > { %v1990_v62 = vpop.eup %1989 }
 0x1f2   : > { %v1028_v2 = vadd.f32 1.0, %v1990_v62  ;;  %v1031_v63 = vmul.f32 -0.5, %v1990_v62  ;;  %v1034_v20 = vand.u32 2147483647, %v1990_v62  ;;  %v1043_v0 = vsel %vm947_vm4, %v2669_v28, %v1037_v26 }
 0x1f3   : > { %v1992_v7 = vpop.eup %1991 }
 0x1f4   : > { %v1994_v35 = vpop.eup %1993  ;;  %v1021_v46 = vmul.f32 0.6931472, %v1992_v7  ;;  %1997 = vlog2.f32 %v1028_v2  ;;  %v1032_v22 = vadd.f32 1.0, %v1031_v63  ;;  %vm1035_vm2 = vcmp.lt.f32.partialorder %v1034_v20, 0.0004427343  ;;  %v2768_v2 = vpop.permute.xlu2 %267 }
 0x1f5   : > { %v1996_v44 = vpop.eup %1995  ;;  %v1012_v5 = vmul.f32 0.6931472, %v1994_v35 }
 0x1f6   : > { %v1027_v39 = vsel %vm1026_vm13, %v1024_v51, %v1021_v46  ;;  %v994_v14 = vmul.f32 0.6931472, %v1996_v44  ;;  %v1033_v23 = vmul.f32 %v1990_v62, %v1032_v22  ;;  %v263_v62 = vpop.permute.xlu0 %262 }
 0x1f7   : > { %v1041_v4 = vadd.f32 %v1027_v39, %v945_v53  ;;  %v1018_v42 = vsel %vm2721_vm1, %v1015_v24, %v1012_v5  ;;  %v479_v53 = vpop.f32.mrf.mxu1  ;;  %v435_v1 = vpop.f32.mrf.mxu0 }
 0x1f8   : > { %v1000_v31 = vsel %vm999_vm5, %v997_v40, %v994_v14  ;;  %v436_v63 = vadd.f32 %v435_v1, %v258_v12 }
 0x1f9   : > { %v1047_v13 = vsel %vm951_vm15, %v2680_v16, %v1041_v4  ;;  %v1045_v16 = vsel %vm949_vm0, %v2674_v58, %v1039_v19  ;;  %v1040_v58 = vadd.f32 %v1018_v42, %v944_v37  ;;  %v1038_v32 = vadd.f32 %v1000_v31, %v942_v59 }
 0x1fa   : > { %v1998_v27 = vpop.eup %1997  ;;  %1831 = vmatpush.msk.msrb.mxu2 %vm882_vm3, %v1047_v13 }
 0x1fb   : > { %v1030_v41 = vmul.f32 0.6931472, %v1998_v27  ;;  %v1046_v28 = vsel %vm950_vm8, %v2678_v17, %v1040_v58  ;;  %v1044_v56 = vsel %vm948_vm9, %v2672_v45, %v1038_v32  ;;  %v1052_v45 = vld [vmem:[%s3077_s1 + $0x80] sm:$0xff]  ;;  %v1053_v17 = vld [vmem:[%s3077_s1 + $0x88] sm:$0x7] }
 0x1fc   : > { %1090 = vmatpush.msrb.mxu2 %v1045_v16  ;;  %v253_v25 = vpop.permute.xlu2 %252 }
 0x1fd   : > { %v1036_v48 = vsel %vm1035_vm2, %v1033_v23, %v1030_v41  ;;  %v433_v11 = vadd.f32 %v432_v50, %v253_v25  ;;  %v480_v39 = vadd.f32 %v479_v53, %v253_v25 }
 0x1fe   : > { %v1042_v49 = vadd.f32 %v1036_v48, %v946_v15  ;;  %1091 = vmatpush.msrb.mxu2 %v1043_v0  ;;  %v248_v29 = vpop.permute.xlu0 %247 }
 0x1ff   : > { %1832 = vmatmul.msk.f32.vlgmr.msrb.gmra.mxu2 %vm1054_vm6, %v1049_v43  ;;  %v430_v6 = vadd.f32 %v429_v47, %v248_v29  ;;  %v482_v33 = vpop.f32.mrf.mxu1  ;;  %v477_v35 = vadd.f32 %v476_v52, %v248_v29  ;;  %v438_v46 = vpop.f32.mrf.mxu0 }
 0x200   : > { %v1048_v55 = vsel %vm952_vm7, %v2684_v30, %v1042_v49  ;;  %v1051_v30 = vld [vmem:[%s3077_s1 + $0x78] sm:$0xff]  ;;  %v483_v8 = vadd.f32 %v482_v33, %v258_v12  ;;  %v439_v4 = vadd.f32 %v438_v46, %v263_v62 }
 0x201   : > { %1837 = vmatpush.msk.msrb.mxu3 %vm882_vm3, %v1048_v55 }
 0x203   : > { %1122 = vmatpush.msrb.mxu3 %v1046_v28 }
 0x205   : > { %1123 = vmatpush.msrb.mxu3 %v1044_v56 }
 0x206   : > { %1838 = vmatmul.msk.f32.vlgmr.msrb.gmra.mxu3 %vm1054_vm6, %v1049_v43 }
 0x207   : > { %1833 = vmatmul.msk.f32.gmra.mxu2 %vm1054_vm6, %v1050_v57  ;;  %v485_v24 = vpop.f32.mrf.mxu1  ;;  %v441_v37 = vpop.f32.mrf.mxu0 }
 0x208   : > { %v486_v43 = vadd.f32 %v485_v24, %v263_v62  ;;  %v442_v48 = vadd.f32 %v441_v37, %v2768_v2 }
 0x20e   : > { %1839 = vmatmul.msk.f32.gmra.mxu3 %vm1054_vm6, %v1050_v57 }
 0x20f   : > { %1834 = vmatmul.msk.f32.gmra.mxu2 %vm1054_vm6, %v1051_v30 }
 0x216   : > { %1840 = vmatmul.msk.f32.gmra.mxu3 %vm1054_vm6, %v1051_v30 }
 0x217   : > { %1835 = vmatmul.msk.f32.gmra.mxu2 %vm1054_vm6, %v1052_v45 }
 0x21e   : > { %1841 = vmatmul.msk.f32.gmra.mxu3 %vm1054_vm6, %v1052_v45  ;;  %v488_v45 = vpop.f32.mrf.mxu1 }
 0x21f   : > { %1836 = vmatmul.msk.f32.gmra.mxu2 %vm1054_vm6, %v1053_v17  ;;  %v489_v53 = vadd.f32 %v488_v45, %v2768_v2 }
 0x226   : > { %1842 = vmatmul.msk.f32.gmra.mxu3 %vm1054_vm6, %v1053_v17 }
 0x282   : > { %v1093_v61 = vpop.f32.mrf.mxu2 }
 0x283   : > { %v2770_v7 = vadd.f32 %v1093_v61, %v430_v6 }
 0x285   : > { %v1180_v9 = vand.u32 2147483647, %v2770_v7  ;;  %vm1160_vm5 = vcmp.ne.f32.partialorder %v2770_v7, %v2770_v7 }
 0x287   : > { %v1190_v18 = vsub.f32 0.0, %v1180_v9 }
 0x289   : > { %v1125_v36 = vpop.f32.mrf.mxu3  ;;  %v1200_v14 = vmul.f32 1.442695, %v1190_v18 }
 0x28a   : > { %v1096_v3 = vpop.f32.mrf.mxu2  ;;  %v2775_v60 = vadd.f32 %v1125_v36, %v477_v35 }
 0x28b   : > { %v2778_v21 = vadd.f32 %v1096_v3, %v433_v11  ;;  %1999 = vpow2.f32 %v1200_v14 }
 0x28c   : > { %v1181_v22 = vand.u32 2147483647, %v2775_v60 }
 0x28d   : > { %v1182_v27 = vand.u32 2147483647, %v2778_v21  ;;  %v1152_v2 = vmax.f32 %v2778_v21, 0.0  ;;  %vm1162_vm4 = vcmp.ne.f32.partialorder %v2778_v21, %v2778_v21 }
 0x28e   : > { %v1191_v38 = vsub.f32 0.0, %v1181_v22 }
 0x28f   : > { %v1192_v0 = vsub.f32 0.0, %v1182_v27 }
 0x290   : > { %v1202_v31 = vmul.f32 1.442695, %v1191_v38 }
 0x291   : > { %v1128_v34 = vpop.f32.mrf.mxu3  ;;  %v1204_v57 = vmul.f32 1.442695, %v1192_v0  ;;  %v2798_v50 = vpop.eup %1999 }
 0x292   : > { %v1099_v10 = vpop.f32.mrf.mxu2  ;;  %v2781_v19 = vadd.f32 %v1128_v34, %v480_v39  ;;  %v1220_v25 = vadd.f32 1.0, %v2798_v50  ;;  %v2817_v39 = vmul.f32 -0.5, %v2798_v50 }
 0x293   : > { %v2772_v51 = vadd.f32 %v1099_v10, %v436_v63  ;;  %v1150_v63 = vmax.f32 %v2770_v7, 0.0 }
 0x294   : > { %v1183_v40 = vand.u32 2147483647, %v2781_v19 }
 0x295   : > { %v1184_v44 = vand.u32 2147483647, %v2772_v51  ;;  %vm1164_vm2 = vcmp.ne.f32.partialorder %v2772_v51, %v2772_v51 }
 0x296   : > { %v1193_v49 = vsub.f32 0.0, %v1183_v40 }
 0x297   : > { %v1194_v20 = vsub.f32 0.0, %v1184_v44 }
 0x298   : > { %v1206_v17 = vmul.f32 1.442695, %v1193_v49 }
 0x299   : > { %v1131_v5 = vpop.f32.mrf.mxu3  ;;  %v1208_v23 = vmul.f32 1.442695, %v1194_v20 }
 0x29a   : > { %v2783_v54 = vadd.f32 %v1131_v5, %v483_v8  ;;  %v1102_v13 = vpop.f32.mrf.mxu2 }
 0x29b   : > { %v2785_v26 = vadd.f32 %v1102_v13, %v439_v4  ;;  %2001 = vpow2.f32 %v1208_v23  ;;  %v1226_v4 = vand.u32 2147483647, %v2798_v50 }
 0x29c   : > { %v1185_v15 = vand.u32 2147483647, %v2783_v54 }
 0x29d   : > { %v1186_v41 = vand.u32 2147483647, %v2785_v26  ;;  %v1156_v13 = vmax.f32 %v2785_v26, 0.0  ;;  %vm1166_vm11 = vcmp.ne.f32.partialorder %v2785_v26, %v2785_v26  ;;  %vm1227_vm8 = vcmp.lt.f32.partialorder %v1226_v4, 0.0004427343 }
 0x29e   : > { %v1195_v16 = vsub.f32 0.0, %v1185_v15 }
 0x29f   : > { %v1196_v42 = vsub.f32 0.0, %v1186_v41  ;;  %v1154_v41 = vmax.f32 %v2772_v51, 0.0 }
 0x2a0   : > { %v1210_v55 = vmul.f32 1.442695, %v1195_v16 }
 0x2a1   : > { %v1212_v58 = vmul.f32 1.442695, %v1196_v42  ;;  %v1134_v59 = vpop.f32.mrf.mxu3  ;;  %v2800_v62 = vpop.eup %2001 }
 0x2a2   : > { %v2792_v32 = vadd.f32 %v1134_v59, %v486_v43  ;;  %v1105_v28 = vpop.f32.mrf.mxu2  ;;  %v1256_v10 = vadd.f32 1.0, %v2800_v62  ;;  %v1259_v44 = vmul.f32 -0.5, %v2800_v62  ;;  %v1262_v49 = vand.u32 2147483647, %v2800_v62 }
 0x2a3   : > { %2003 = vpow2.f32 %v1212_v58  ;;  %v2794_v56 = vadd.f32 %v1105_v28, %v442_v48  ;;  %v1155_v28 = vmax.f32 %v2783_v54, 0.0 }
 0x2a4   : > { %v1187_v30 = vand.u32 2147483647, %v2792_v32  ;;  %2005 = vpow2.f32 %v1202_v31  ;;  %v1157_v24 = vmax.f32 %v2792_v32, 0.0  ;;  %v1260_v43 = vadd.f32 1.0, %v1259_v44 }
 0x2a5   : > { %v1188_v47 = vand.u32 2147483647, %v2794_v56  ;;  %2007 = vpow2.f32 %v1210_v55  ;;  %v1158_v34 = vmax.f32 %v2794_v56, 0.0  ;;  %vm1168_vm13 = vcmp.ne.f32.partialorder %v2794_v56, %v2794_v56 }
 0x2a6   : > { %v1197_v52 = vsub.f32 0.0, %v1187_v30  ;;  %2009 = vpow2.f32 %v1204_v57  ;;  %vm2852_vm14 = vcmp.lt.f32.partialorder %v1262_v49, 0.0004427343 }
 0x2a7   : > { %v1198_v61 = vsub.f32 0.0, %v1188_v47  ;;  %2011 = vpow2.f32 %v1206_v17 }
 0x2a8   : > { %v1214_v1 = vmul.f32 1.442695, %v1197_v52 }
 0x2a9   : > { %v2004_v36 = vpop.eup %2003  ;;  %v1216_v3 = vmul.f32 1.442695, %v1198_v61  ;;  %v1137_v29 = vpop.f32.mrf.mxu3 }
 0x2aa   : > { %2013 = vpow2.f32 %v1214_v1  ;;  %v2803_v6 = vadd.f32 %v1137_v29, %v489_v53  ;;  %v1274_v12 = vadd.f32 1.0, %v2004_v36  ;;  %v2806_v33 = vpop.eup %2005  ;;  %v1277_v9 = vmul.f32 -0.5, %v2004_v36 }
 0x2ab   : > { %2015 = vpow2.f32 %v1216_v3  ;;  %v2811_v35 = vpop.eup %2007  ;;  %v1280_v11 = vand.u32 2147483647, %v2004_v36  ;;  %v2823_v22 = vadd.f32 1.0, %v2806_v33  ;;  %v2826_v5 = vmul.f32 -0.5, %v2806_v33 }
 0x2ac   : > { %v1189_v46 = vand.u32 2147483647, %v2803_v6  ;;  %2017 = vlog2.f32 %v1274_v12  ;;  %v2819_v8 = vpop.eup %2009  ;;  %v1265_v14 = vadd.f32 1.0, %v2811_v35  ;;  %v1235_v27 = vand.u32 2147483647, %v2806_v33 }
 0x2ad   : > { %2019 = vlog2.f32 %v1256_v10  ;;  %v2828_v20 = vpop.eup %2011  ;;  %v1159_v37 = vmax.f32 %v2803_v6, 0.0  ;;  %v1278_v40 = vadd.f32 1.0, %v1277_v9  ;;  %vm2836_vm10 = vcmp.lt.f32.partialorder %v1280_v11, 0.0004427343 }
 0x2ae   : > { %v1199_v18 = vsub.f32 0.0, %v1189_v46  ;;  %2021 = vlog2.f32 %v1265_v14  ;;  %v1268_v45 = vmul.f32 -0.5, %v2811_v35  ;;  %v1271_v52 = vand.u32 2147483647, %v2811_v35 }
 0x2af   : > { %v1279_v57 = vmul.f32 %v2004_v36, %v1278_v40  ;;  %v1238_v1 = vadd.f32 1.0, %v2819_v8  ;;  %v1261_v29 = vmul.f32 %v2800_v62, %v1260_v43  ;;  %v1241_v10 = vmul.f32 -0.5, %v2819_v8 }
 0x2b0   : > { %v2014_v15 = vpop.eup %2013  ;;  %v1218_v38 = vmul.f32 1.442695, %v1199_v18  ;;  %v1269_v11 = vadd.f32 1.0, %v1268_v45  ;;  %vm2868_vm1 = vcmp.lt.f32.partialorder %v1271_v52, 0.0004427343  ;;  %v1233_v9 = vadd.f32 1.0, %v2826_v5 }
 0x2b1   : > { %v2016_v23 = vpop.eup %2015  ;;  %v1283_v42 = vadd.f32 1.0, %v2014_v15  ;;  %v1286_v31 = vmul.f32 -0.5, %v2014_v15  ;;  %v1289_v30 = vand.u32 2147483647, %v2014_v15  ;;  %v1242_v49 = vadd.f32 1.0, %v1241_v10 }
 0x2b2   : > { %v2018_v48 = vpop.eup %2017  ;;  %2023 = vpow2.f32 %v1218_v38  ;;  %v1292_v0 = vadd.f32 1.0, %v2016_v23  ;;  %v1295_v59 = vmul.f32 -0.5, %v2016_v23  ;;  %v1298_v17 = vand.u32 2147483647, %v2016_v23 }
 0x2b3   : > { %v2020_v58 = vpop.eup %2019  ;;  %v1276_v55 = vmul.f32 0.6931472, %v2018_v48  ;;  %2025 = vlog2.f32 %v1283_v42  ;;  %v1287_v53 = vadd.f32 1.0, %v1286_v31  ;;  %vm2857_vm15 = vcmp.lt.f32.partialorder %v1289_v30, 0.0004427343 }
 0x2b4   : > { %2027 = vlog2.f32 %v1292_v0  ;;  %v1258_v47 = vmul.f32 0.6931472, %v2020_v58  ;;  %v2022_v3 = vpop.eup %2021  ;;  %v1296_v36 = vadd.f32 1.0, %v1295_v59  ;;  %vm2862_vm0 = vcmp.lt.f32.partialorder %v1298_v17, 0.0004427343 }
 0x2b5   : > { %v1282_v61 = vsel %vm2836_vm10, %v1279_v57, %v1276_v55  ;;  %2029 = vlog2.f32 %v1220_v25  ;;  %v1247_v25 = vadd.f32 1.0, %v2828_v20  ;;  %v1288_v42 = vmul.f32 %v2014_v15, %v1287_v53 }
 0x2b6   : > { %2031 = vlog2.f32 %v1238_v1  ;;  %v1316_v14 = vadd.f32 %v1282_v61, %v1156_v13  ;;  %v1264_v38 = vsel %vm2852_vm14, %v1261_v29, %v1258_v47  ;;  %v1267_v43 = vmul.f32 0.6931472, %v2022_v3 }
 0x2b7   : > { %v1297_v31 = vmul.f32 %v2016_v23, %v1296_v36  ;;  %v1314_v13 = vadd.f32 %v1264_v38, %v1154_v41  ;;  %v1270_v59 = vmul.f32 %v2811_v35, %v1269_v11  ;;  %v1244_v55 = vand.u32 2147483647, %v2819_v8 }
 0x2b8   : > { %v2024_v46 = vpop.eup %2023  ;;  %v1326_v23 = vsel %vm1166_vm11, %v2785_v26, %v1316_v14  ;;  %v1250_v30 = vmul.f32 -0.5, %v2828_v20  ;;  %v1243_v61 = vmul.f32 %v2819_v8, %v1242_v49  ;;  %v1224_v53 = vadd.f32 1.0, %v2817_v39  ;;  %v1344_v49 = vpop.permute.xlu2 %1343 }
 0x2b9   : > { %v2026_v44 = vpop.eup %2025  ;;  %v1301_v62 = vadd.f32 1.0, %v2024_v46  ;;  %v1304_v16 = vmul.f32 -0.5, %v2024_v46  ;;  %v1307_v17 = vand.u32 2147483647, %v2024_v46  ;;  %v1273_v47 = vsel %vm2868_vm1, %v1270_v59, %v1267_v43 }
 0x2ba   : > { %v2028_v40 = vpop.eup %2027  ;;  %v1285_v57 = vmul.f32 0.6931472, %v2026_v44  ;;  %vm1245_vm7 = vcmp.lt.f32.partialorder %v1244_v55, 0.0004427343  ;;  %v1253_v29 = vand.u32 2147483647, %v2828_v20  ;;  %v1225_v39 = vmul.f32 %v2798_v50, %v1224_v53 }
 0x2bb   : > { %v1294_v0 = vmul.f32 0.6931472, %v2028_v40  ;;  %2033 = vlog2.f32 %v1301_v62  ;;  %v2030_v58 = vpop.eup %2029  ;;  %v1305_v45 = vadd.f32 1.0, %v1304_v16  ;;  %vm1308_vm9 = vcmp.lt.f32.partialorder %v1307_v17, 0.0004427343  ;;  %v1330_v40 = vld [vmem:[%s3077_s1 + $0x90] sm:$0xff]  ;;  %v1349_v17 = vpop.permute.xlu1 %1348 }
 0x2bc   : > { %2035 = vlog2.f32 %v1247_v25  ;;  %v2032_v41 = vpop.eup %2031  ;;  %v1222_v26 = vmul.f32 0.6931472, %v2030_v58  ;;  %v1291_v8 = vsel %vm2857_vm15, %v1288_v42, %v1285_v57  ;;  %v1324_v18 = vsel %vm1164_vm2, %v2772_v51, %v1314_v13 }
 0x2bd   : > { %v1300_v15 = vsel %vm2862_vm0, %v1297_v31, %v1294_v0  ;;  %v1240_v52 = vmul.f32 0.6931472, %v2032_v41  ;;  %2037 = vlog2.f32 %v2823_v22  ;;  %v1306_v11 = vmul.f32 %v2024_v46, %v1305_v45 }
 0x2be   : > { %v1318_v35 = vadd.f32 %v1300_v15, %v1158_v34  ;;  %v1251_v34 = vadd.f32 1.0, %v1250_v30  ;;  %v1228_v25 = vsel %vm1227_vm8, %v1225_v39, %v1222_v26  ;;  %v1317_v4 = vadd.f32 %v1291_v8, %v1157_v24 }
 0x2bf   : > { %v1246_v36 = vsel %vm1245_vm7, %v1243_v61, %v1240_v52  ;;  %v1153_v5 = vmax.f32 %v2781_v19, 0.0  ;;  %vm2920_vm10 = vcmp.lt.f32.partialorder %v1253_v29, 0.0004427343  ;;  %vm1169_vm11 = vcmp.ne.f32.partialorder %v2803_v6, %v2803_v6 }
 0x2c0   : > { %v1328_v1 = vsel %vm1168_vm13, %v2794_v56, %v1318_v35  ;;  %v1312_v56 = vadd.f32 %v1246_v36, %v1152_v2  ;;  %v1252_v46 = vmul.f32 %v2828_v20, %v1251_v34  ;;  %v1310_v2 = vadd.f32 %v1228_v25, %v1150_v63 }
 0x2c1   : > { %v2034_v3 = vpop.eup %2033  ;;  %1843 = vmatpush.msk.msra.mxu2 %vm1361_vm12, %v1328_v1  ;;  %v1315_v51 = vadd.f32 %v1273_v47, %v1155_v28  ;;  %v1234_v38 = vmul.f32 %v2806_v33, %v1233_v9  ;;  %vm1351_vm13 = vcmask 285696   ;;  %vm1167_vm14 = vcmp.ne.f32.partialorder %v2792_v32, %v2792_v32  ;;  %v1331_v33 = vld [vmem:[%s3077_s1 + $0x98] sm:$0xff] }
 0x2c2   : > { %v2036_v12 = vpop.eup %2035  ;;  %v1303_v10 = vmul.f32 0.6931472, %v2034_v3  ;;  %v1322_v63 = vsel %vm1162_vm4, %v2778_v21, %v1312_v56  ;;  %v1320_v21 = vsel %vm1160_vm5, %v2770_v7, %v1310_v2  ;;  %vm1236_vm15 = vcmp.lt.f32.partialorder %v1235_v27, 0.0004427343 }
 0x2c3   : > { %1380 = vmatpush.msra.mxu2 %v1326_v23  ;;  %v1249_v22 = vmul.f32 0.6931472, %v2036_v12  ;;  %v2038_v14 = vpop.eup %2037  ;;  %v1151_v16 = vmax.f32 %v2775_v60, 0.0  ;;  %vm1163_vm0 = vcmp.ne.f32.partialorder %v2781_v19, %v2781_v19  ;;  %vm1161_vm1 = vcmp.ne.f32.partialorder %v2775_v60, %v2775_v60 }
 0x2c4   : > { %v1309_v44 = vsel %vm1308_vm9, %v1306_v11, %v1303_v10 }
 0x2c5   : > { %v1319_v50 = vadd.f32 %v1309_v44, %v1159_v37  ;;  %1381 = vmatpush.msra.mxu2 %v1324_v18  ;;  %v1255_v20 = vsel %vm2920_vm10, %v1252_v46, %v1249_v22  ;;  %v1231_v37 = vmul.f32 0.6931472, %v2038_v14 }
 0x2c6   : > { %v1313_v28 = vadd.f32 %v1255_v20, %v1153_v5 }
 0x2c7   : > { %v1329_v24 = vsel %vm1169_vm11, %v2803_v6, %v1319_v50  ;;  %1382 = vmatpush.msra.mxu2 %v1322_v63  ;;  %v1327_v6 = vsel %vm1167_vm14, %v2792_v32, %v1317_v4  ;;  %v1237_v42 = vsel %vm1236_vm15, %v1234_v38, %v1231_v37 }
 0x2c8   : > { %1847 = vmatpush.msk.msra.mxu3 %vm1361_vm12, %v1329_v24  ;;  %vm1165_vm12 = vcmp.ne.f32.partialorder %v2783_v54, %v2783_v54  ;;  %v1311_v48 = vadd.f32 %v1237_v42, %v1151_v16  ;;  %v1323_v7 = vsel %vm1163_vm0, %v2781_v19, %v1313_v28 }
 0x2c9   : > { %1383 = vmatpush.msra.mxu2 %v1320_v21  ;;  %v1325_v43 = vsel %vm1165_vm12, %v2783_v54, %v1315_v51  ;;  %v1332_v54 = vld [vmem:[%s3077_s1 + $0xa0] sm:$0xf] }
 0x2ca   : > { %1406 = vmatpush.msra.mxu3 %v1327_v6  ;;  %1844 = vmatmul.msk.f32.vlgmr.msra.gmra.mxu2 %vm1351_vm13, %v1330_v40  ;;  %v1321_v32 = vsel %vm1161_vm1, %v2775_v60, %v1311_v48  ;;  %v1339_v60 = vpop.permute.xlu0 %1338 }
 0x2cc   : > { %1407 = vmatpush.msra.mxu3 %v1325_v43 }
 0x2ce   : > { %1408 = vmatpush.msra.mxu3 %v1323_v7 }
 0x2d0   : > { %1409 = vmatpush.msra.mxu3 %v1321_v32 }
 0x2d1   : > { %1848 = vmatmul.msk.f32.vlgmr.msra.gmra.mxu3 %vm1351_vm13, %v1330_v40 }
 0x2d2   : > { %1845 = vmatmul.msk.f32.gmra.mxu2 %vm1351_vm13, %v1331_v33 }
 0x2d9   : > { %1849 = vmatmul.msk.f32.gmra.mxu3 %vm1351_vm13, %v1331_v33 }
 0x2da   : > { %1846 = vmatmul.msk.f32.gmra.mxu2 %vm1351_vm13, %v1332_v54 }
 0x2e1   : > { %1850 = vmatmul.msk.f32.gmra.mxu3 %vm1351_vm13, %v1332_v54 }
 0x34d   : > { %v1385_v19 = vpop.f32.mrf.mxu2 }
 0x34e   : > { %v2971_v27 = vadd.f32 %v1385_v19, %v1339_v60 }
 0x350   : > { %v1438_v0 = vand.u32 2147483647, %v2971_v27  ;;  %vm1426_vm11 = vcmp.ne.f32.partialorder %v2971_v27, %v2971_v27 }
 0x352   : > { %v1444_v58 = vsub.f32 0.0, %v1438_v0 }
 0x354   : > { %v1411_v31 = vpop.f32.mrf.mxu3  ;;  %v1450_v57 = vmul.f32 1.442695, %v1444_v58 }
 0x355   : > { %v2974_v13 = vadd.f32 %v1411_v31, %v1339_v60  ;;  %v1388_v59 = vpop.f32.mrf.mxu2 }
 0x356   : > { %v2976_v55 = vadd.f32 %v1388_v59, %v1344_v49  ;;  %2039 = vpow2.f32 %v1450_v57 }
 0x357   : > { %v1439_v15 = vand.u32 2147483647, %v2974_v13  ;;  %vm1427_vm12 = vcmp.ne.f32.partialorder %v2974_v13, %v2974_v13 }
 0x358   : > { %v1440_v23 = vand.u32 2147483647, %v2976_v55  ;;  %v1422_v60 = vmax.f32 %v2976_v55, 0.0  ;;  %vm1428_vm8 = vcmp.ne.f32.partialorder %v2976_v55, %v2976_v55 }
 0x359   : > { %v1445_v41 = vsub.f32 0.0, %v1439_v15 }
 0x35a   : > { %v1446_v30 = vsub.f32 0.0, %v1440_v23  ;;  %v1420_v23 = vmax.f32 %v2971_v27, 0.0 }
 0x35b   : > { %v1452_v53 = vmul.f32 1.442695, %v1445_v41 }
 0x35c   : > { %v1454_v35 = vmul.f32 1.442695, %v1446_v30  ;;  %v1414_v45 = vpop.f32.mrf.mxu3  ;;  %v2040_v8 = vpop.eup %2039 }
 0x35d   : > { %v2980_v47 = vadd.f32 %v1414_v45, %v1344_v49  ;;  %v1391_v52 = vpop.f32.mrf.mxu2  ;;  %v1462_v22 = vadd.f32 1.0, %v2040_v8  ;;  %v1465_v5 = vmul.f32 -0.5, %v2040_v8  ;;  %v1468_v42 = vand.u32 2147483647, %v2040_v8 }
 0x35e   : > { %2041 = vpow2.f32 %v1454_v35  ;;  %v2982_v61 = vadd.f32 %v1391_v52, %v1349_v17 }
 0x35f   : > { %v1441_v26 = vand.u32 2147483647, %v2980_v47  ;;  %2043 = vpow2.f32 %v1452_v53  ;;  %v1466_v37 = vadd.f32 1.0, %v1465_v5  ;;  %vm1469_vm5 = vcmp.lt.f32.partialorder %v1468_v42, 0.0004427343 }
 0x360   : > { %v1442_v1 = vand.u32 2147483647, %v2982_v61  ;;  %v1424_v6 = vmax.f32 %v2982_v61, 0.0  ;;  %vm1430_vm7 = vcmp.ne.f32.partialorder %v2982_v61, %v2982_v61  ;;  %v1421_v5 = vmax.f32 %v2974_v13, 0.0 }
 0x361   : > { %v1447_v34 = vsub.f32 0.0, %v1441_v26  ;;  %v1467_v0 = vmul.f32 %v2040_v8, %v1466_v37  ;;  %vm1429_vm15 = vcmp.ne.f32.partialorder %v2980_v47, %v2980_v47 }
 0x362   : > { %v1448_v3 = vsub.f32 0.0, %v1442_v1 }
 0x363   : > { %v1456_v36 = vmul.f32 1.442695, %v1447_v34 }
 0x364   : > { %v2042_v29 = vpop.eup %2041  ;;  %v1458_v39 = vmul.f32 1.442695, %v1448_v3  ;;  %v1417_v12 = vpop.f32.mrf.mxu3 }
 0x365   : > { %2045 = vpow2.f32 %v1456_v36  ;;  %v2986_v10 = vadd.f32 %v1417_v12, %v1349_v17  ;;  %v1480_v11 = vadd.f32 1.0, %v2042_v29  ;;  %v2989_v9 = vpop.eup %2043  ;;  %v1483_v2 = vmul.f32 -0.5, %v2042_v29 }
 0x366   : > { %2047 = vpow2.f32 %v1458_v39  ;;  %v1471_v14 = vadd.f32 1.0, %v2989_v9  ;;  %v1486_v24 = vand.u32 2147483647, %v2042_v29  ;;  %v1474_v32 = vmul.f32 -0.5, %v2989_v9 }
 0x367   : > { %v1443_v56 = vand.u32 2147483647, %v2986_v10  ;;  %2049 = vlog2.f32 %v1480_v11  ;;  %v1484_v63 = vadd.f32 1.0, %v1483_v2  ;;  %v1477_v34 = vand.u32 2147483647, %v2989_v9 }
 0x368   : > { %2051 = vlog2.f32 %v1462_v22  ;;  %vm2999_vm2 = vcmp.lt.f32.partialorder %v1486_v24, 0.0004427343  ;;  %v1475_v45 = vadd.f32 1.0, %v1474_v32  ;;  %v1423_v12 = vmax.f32 %v2980_v47, 0.0 }
 0x369   : > { %v1449_v25 = vsub.f32 0.0, %v1443_v56  ;;  %v1485_v48 = vmul.f32 %v2042_v29, %v1484_v63  ;;  %vm1478_vm13 = vcmp.lt.f32.partialorder %v1477_v34, 0.0004427343  ;;  %vm1431_vm14 = vcmp.ne.f32.partialorder %v2986_v10, %v2986_v10  ;;  %v1529_v63 = vld [vmem:[%s3077_s1 + $0xb0] sm:$0x1] }
 0x36a   : > { %v1476_v56 = vmul.f32 %v2989_v9, %v1475_v45 }
 0x36b   : > { %v2991_v44 = vpop.eup %2045  ;;  %v1460_v18 = vmul.f32 1.442695, %v1449_v25 }
 0x36c   : > { %v2048_v46 = vpop.eup %2047  ;;  %v1489_v50 = vadd.f32 1.0, %v2991_v44  ;;  %v1492_v16 = vmul.f32 -0.5, %v2991_v44  ;;  %v1495_v41 = vand.u32 2147483647, %v2991_v44 }
 0x36d   : > { %2053 = vpow2.f32 %v1460_v18  ;;  %v1498_v4 = vadd.f32 1.0, %v2048_v46  ;;  %v1501_v62 = vmul.f32 -0.5, %v2048_v46  ;;  %v2050_v51 = vpop.eup %2049  ;;  %v1504_v28 = vand.u32 2147483647, %v2048_v46 }
 0x36e   : > { %v2052_v20 = vpop.eup %2051  ;;  %v1482_v40 = vmul.f32 0.6931472, %v2050_v51  ;;  %v1493_v15 = vadd.f32 1.0, %v1492_v16  ;;  %vm3016_vm9 = vcmp.lt.f32.partialorder %v1495_v41, 0.0004427343  ;;  %v1425_v18 = vmax.f32 %v2986_v10, 0.0 }
 0x36f   : > { %2055 = vlog2.f32 %v1498_v4  ;;  %v1502_v38 = vadd.f32 1.0, %v1501_v62  ;;  %v1464_v7 = vmul.f32 0.6931472, %v2052_v20  ;;  %vm1505_vm4 = vcmp.lt.f32.partialorder %v1504_v28, 0.0004427343 }
 0x370   : > { %2057 = vlog2.f32 %v1489_v50  ;;  %v1488_v59 = vsel %vm2999_vm2, %v1485_v48, %v1482_v40  ;;  %v1494_v8 = vmul.f32 %v2991_v44, %v1493_v15 }
 0x371   : > { %2059 = vlog2.f32 %v1471_v14  ;;  %v1503_v58 = vmul.f32 %v2048_v46, %v1502_v38  ;;  %v1470_v35 = vsel %vm1469_vm5, %v1467_v0, %v1464_v7  ;;  %v1518_v26 = vadd.f32 %v1488_v59, %v1422_v60  ;;  %v1528_v46 = vld [vmem:[%s3077_s1 + $0xa8] sm:$0xff]  ;;  %v1540_v38 = vpop.permute.xlu2 %1539 }
 0x372   : > { %v1516_v36 = vadd.f32 %v1470_v35, %v1420_v23 }
 0x373   : > { %v2054_v21 = vpop.eup %2053  ;;  %v1524_v25 = vsel %vm1428_vm8, %v2976_v55, %v1518_v26 }
 0x374   : > { %v1507_v43 = vadd.f32 1.0, %v2054_v21  ;;  %v1510_v54 = vmul.f32 -0.5, %v2054_v21  ;;  %v1513_v1 = vand.u32 2147483647, %v2054_v21  ;;  %v1522_v2 = vsel %vm1426_vm11, %v2971_v27, %v1516_v36 }
 0x375   : > { %v2056_v33 = vpop.eup %2055 }
 0x376   : > { %v2058_v31 = vpop.eup %2057  ;;  %v1500_v49 = vmul.f32 0.6931472, %v2056_v33  ;;  %2061 = vlog2.f32 %v1507_v43  ;;  %v1511_v52 = vadd.f32 1.0, %v1510_v54  ;;  %vm1514_vm10 = vcmp.lt.f32.partialorder %v1513_v1, 0.0004427343 }
 0x377   : > { %v2060_v57 = vpop.eup %2059  ;;  %v1491_v53 = vmul.f32 0.6931472, %v2058_v31 }
 0x378   : > { %v1506_v30 = vsel %vm1505_vm4, %v1503_v58, %v1500_v49  ;;  %v1473_v29 = vmul.f32 0.6931472, %v2060_v57 }
 0x379   : > { %v1520_v17 = vadd.f32 %v1506_v30, %v1424_v6  ;;  %v1497_v44 = vsel %vm3016_vm9, %v1494_v8, %v1491_v53 }
 0x37a   : > { %v1479_v50 = vsel %vm1478_vm13, %v1476_v56, %v1473_v29  ;;  %v1519_v4 = vadd.f32 %v1497_v44, %v1423_v12 }
 0x37b   : > { %v1526_v3 = vsel %vm1430_vm7, %v2982_v61, %v1520_v17  ;;  %v1512_v61 = vmul.f32 %v2054_v21, %v1511_v52  ;;  %v1517_v14 = vadd.f32 %v1479_v50, %v1421_v5 }
 0x37c   : > { %v2062_v39 = vpop.eup %2061  ;;  %1851 = vmatpush.msk.msrb.mxu2 %vm882_vm3, %v1526_v3  ;;  %v1525_v27 = vsel %vm1429_vm15, %v2980_v47, %v1519_v4 }
 0x37d   : > { %v1509_v22 = vmul.f32 0.6931472, %v2062_v39  ;;  %v1523_v51 = vsel %vm1427_vm12, %v2974_v13, %v1517_v14 }
 0x37e   : > { %1568 = vmatpush.msrb.mxu2 %v1524_v25 }
 0x37f   : > { %v1515_v9 = vsel %vm1514_vm10, %v1512_v61, %v1509_v22 }
 0x380   : > { %v1521_v55 = vadd.f32 %v1515_v9, %v1425_v18  ;;  %1569 = vmatpush.msrb.mxu2 %v1522_v2 }
 0x381   : > { %1852 = vmatmul.msk.f32.vlgmr.msrb.gmra.mxu2 %vm1054_vm6, %v1528_v46 }
 0x382   : > { %v1527_v62 = vsel %vm1431_vm14, %v2986_v10, %v1521_v55  ;;  %v1535_v10 = vpop.permute.xlu1 %1534 }
 0x383   : > { %1854 = vmatpush.msk.msrb.mxu3 %vm882_vm3, %v1527_v62 }
 0x385   : > { %1591 = vmatpush.msrb.mxu3 %v1525_v27 }
 0x387   : > { %1592 = vmatpush.msrb.mxu3 %v1523_v51 }
 0x388   : > { %1855 = vmatmul.msk.f32.vlgmr.msrb.gmra.mxu3 %vm1054_vm6, %v1528_v46 }
 0x389   : > { %1853 = vmatmul.msk.f32.gmra.mxu2 %vm1054_vm6, %v1529_v63 }
 0x390   : > { %1856 = vmatmul.msk.f32.gmra.mxu3 %vm1054_vm6, %v1529_v63 }
 0x404   : > { %v1571_v20 = vpop.f32.mrf.mxu2 }
 0x405   : > { %v1572_v47 = vadd.f32 %v1571_v20, %v1535_v10 }
 0x407   : > { %v1857_v24 = vmul.f32 -1.442695, %v1572_v47 }
 0x409   : > { %2063 = vpow2.f32 %v1857_v24 }
 0x40b   : > { %v1594_v37 = vpop.f32.mrf.mxu3 }
 0x40c   : > { %v1595_v40 = vadd.f32 %v1594_v37, %v1535_v10  ;;  %v1574_v13 = vpop.f32.mrf.mxu2 }
 0x40d   : > { %v1575_v21 = vadd.f32 %v1574_v13, %v1540_v38 }
 0x40e   : > { %v1858_v6 = vmul.f32 -1.442695, %v1595_v40 }
 0x40f   : > { %v2064_v28 = vpop.eup %2063  ;;  %v1859_v16 = vmul.f32 -1.442695, %v1575_v21 }
 0x410   : > { %v1612_v42 = vadd.f32 1.0, %v2064_v28  ;;  %2065 = vpow2.f32 %v1858_v6 }
 0x411   : > { %2067 = vpow2.f32 %v1859_v16 }
 0x412   : > { %2069 = vrcp.f32 %v1612_v42  ;;  %v1627_v49 = vand.u32 2147483648, %v1612_v42  ;;  %v1625_v59 = vand.u32 2147483647, %v1612_v42  ;;  %vm1621_vm6 = vweird.f32 %v1612_v42 }
 0x413   : > { %v1597_v43 = vpop.f32.mrf.mxu3 }
 0x414   : > { %v1598_v48 = vadd.f32 %v1597_v43, %v1540_v38  ;;  %v1628_v35 = vor.u32 1.1754944e-38, %v1627_v49  ;;  %vm1626_vm1 = vcmp.eq.f32.partialorder %v1625_v59, 8.507059e+37 }
 0x416   : > { %v2066_v7 = vpop.eup %2065  ;;  %v1860_v32 = vmul.f32 -1.442695, %v1598_v48 }
 0x417   : > { %v2068_v33 = vpop.eup %2067  ;;  %v1613_v54 = vadd.f32 1.0, %v2066_v7 }
 0x418   : > { %v2070_v60 = vpop.eup %2069  ;;  %v1614_v19 = vadd.f32 1.0, %v2068_v33  ;;  %2071 = vpow2.f32 %v1860_v32 }
 0x419   : > { %v1617_v0 = vmul.f32 %v2070_v60, %v1612_v42  ;;  %2073 = vrcp.f32 %v1613_v54  ;;  %vm1622_vm3 = vweird.f32 %v2070_v60  ;;  %v1642_v1 = vand.u32 2147483648, %v1613_v54 }
 0x41a   : > { %2075 = vrcp.f32 %v1614_v19  ;;  %vm1623_vm0 = vmor %vm1621_vm6, %vm1622_vm3  ;;  %v1640_v8 = vand.u32 2147483647, %v1613_v54  ;;  %v1657_v36 = vand.u32 2147483648, %v1614_v19  ;;  %v1655_v39 = vand.u32 2147483647, %v1614_v19 }
 0x41b   : > { %v1618_v31 = vsub.f32 1.0, %v1617_v0  ;;  %vm1636_vm5 = vweird.f32 %v1613_v54  ;;  %v1643_v56 = vor.u32 1.1754944e-38, %v1642_v1  ;;  %vm1651_vm8 = vweird.f32 %v1614_v19 }
 0x41c   : > { %vm1641_vm9 = vcmp.eq.f32.partialorder %v1640_v8, 8.507059e+37  ;;  %v1658_v25 = vor.u32 1.1754944e-38, %v1657_v36  ;;  %vm1656_vm11 = vcmp.eq.f32.partialorder %v1655_v39, 8.507059e+37 }
 0x41d   : > { %v1619_v58 = vmul.f32 %v2070_v60, %v1618_v31 }
 0x41e   : > { %v2072_v15 = vpop.eup %2071 }
 0x41f   : > { %v2074_v23 = vpop.eup %2073  ;;  %v1620_v57 = vadd.f32 %v2070_v60, %v1619_v58  ;;  %v1615_v30 = vadd.f32 1.0, %v2072_v15 }
 0x420   : > { %v2076_v41 = vpop.eup %2075  ;;  %v1632_v45 = vmul.f32 %v2074_v23, %v1613_v54  ;;  %vm1637_vm2 = vweird.f32 %v2074_v23 }
 0x421   : > { %v1624_v17 = vsel %vm1623_vm0, %v2070_v60, %v1620_v57  ;;  %v1647_v52 = vmul.f32 %v2076_v41, %v1614_v19  ;;  %2077 = vrcp.f32 %v1615_v30  ;;  %vm1652_vm4 = vweird.f32 %v2076_v41  ;;  %vm1638_vm7 = vmor %vm1636_vm5, %vm1637_vm2 }
 0x422   : > { %v1629_v26 = vsel %vm1626_vm1, %v1628_v35, %v1624_v17  ;;  %v1633_v53 = vsub.f32 1.0, %v1632_v45  ;;  %vm1653_vm10 = vmor %vm1651_vm8, %vm1652_vm4  ;;  %v1672_v50 = vand.u32 2147483648, %v1615_v30  ;;  %v1670_v4 = vand.u32 2147483647, %v1615_v30 }
 0x423   : > { %1676 = vst [vmem:[%s3050_s12] sm:$0xff] %v1629_v26  ;;  %v1648_v34 = vsub.f32 1.0, %v1647_v52  ;;  %vm1666_vm14 = vweird.f32 %v1615_v30 }
 0x424   : > { %v1634_v3 = vmul.f32 %v2074_v23, %v1633_v53  ;;  %v1673_v62 = vor.u32 1.1754944e-38, %v1672_v50  ;;  %vm1671_vm12 = vcmp.eq.f32.partialorder %v1670_v4, 8.507059e+37 }
 0x425   : > { %v1649_v29 = vmul.f32 %v2076_v41, %v1648_v34 }
 0x426   : > { %v1635_v12 = vadd.f32 %v2074_v23, %v1634_v3 }
 0x427   : > { %v2078_v11 = vpop.eup %2077  ;;  %v1650_v22 = vadd.f32 %v2076_v41, %v1649_v29 }
 0x428   : > { %v1639_v61 = vsel %vm1638_vm7, %v2074_v23, %v1635_v12  ;;  %v1662_v44 = vmul.f32 %v2078_v11, %v1615_v30  ;;  %vm1667_vm13 = vweird.f32 %v2078_v11 }
 0x429   : > { %v1644_v18 = vsel %vm1641_vm9, %v1643_v56, %v1639_v61  ;;  %v1654_v46 = vsel %vm1653_vm10, %v2076_v41, %v1650_v22  ;;  %vm1668_vm15 = vmor %vm1666_vm14, %vm1667_vm13 }
 0x42a   : > { %1677 = vst [vmem:[%s3050_s12 + $0x8] sm:$0xff] %v1644_v18  ;;  %v1659_v9 = vsel %vm1656_vm11, %v1658_v25, %v1654_v46  ;;  %v1663_v2 = vsub.f32 1.0, %v1662_v44  ;;  %v1702_v51 = vld [vmem:[%s3050_s12] sm:$0xff] (%p2149_p4) }
 0x42b   : > { %1678 = vst [vmem:[%s3050_s12 + $0x10] sm:$0x1] %v1659_v9 }
 0x42c   : > { %v1664_v55 = vmul.f32 %v2078_v11, %v1663_v2  ;;  %1703 = vst [vmem:[%s1689_s29] sm:$0xff] (%p2149_p4), %v1702_v51 }
 0x42e   : > { %v1665_v5 = vadd.f32 %v2078_v11, %v1664_v55  ;;  %1686 = sbr.rel (!%p2149_p4) target bundleno = 1083 (0x43b), region = 36 }
 0x430   : > { %v1669_v14 = vsel %vm1668_vm15, %v2078_v11, %v1665_v5 }
 0x431   : > { %v1674_v27 = vsel %vm1671_vm12, %v1673_v62, %v1669_v14  ;;  %v1704_v63 = vld [vmem:[%s3050_s12 + $0x8] sm:$0xff] (%p2149_p4) }
 0x432   : > { %1679 = vst [vmem:[%s3050_s12 + $0x18] sm:$0x1] %v1674_v27  ;;  %v1706_v10 = vld [vmem:[%s3050_s12 + $0x10] sm:$0xff] (%p2149_p4) }
 0x433   : > { %1705 = vst [vmem:[%s1689_s29 + $0x8] sm:$0xff] %v1704_v63 }
 0x434   : > { %1707 = vst [vmem:[%s1689_s29 + $0x20] sm:$0xff] %v1706_v10 }
 0x439   : > { %v1708_v20 = vld [vmem:[%s3050_s12 + $0x18] sm:$0xff] }
 0x43a   : > { %1709 = vst [vmem:[%s1689_s29 + $0x28] sm:$0xff] %v1708_v20 }
 0x43b PF: > { %p10_p8 = scmp.ge.s32.totalorder %s2139_s16, 4   ;;  %s3121_s12 = smov %s2097_s13 }
 0x43c   : > { %s3122_s13 = smov %s2147_s19  ;;  %s3123_s14 = smov %s2139_s16 }
 0x43d   :  { %12 = sbr.rel (!%p10_p8) target bundleno = 2 (0x2), region = 85 }

</bundles_post_ra>
